<compile_context>
chip_gen: v7x
topology: tpu7x:2x2x1
jax: 0.10.0
libtpu: 0.0.40
codegen_flags: <defaults>
</compile_context>

<pallas_src>
from functools import partial

import jax
import jax.numpy as jnp
import numpy as np
from jax.experimental import pallas as pl
from jax.experimental.pallas import tpu as pltpu

EXPANSION = 4
BN_EPS = 1e-5


# ----------------------------------------------------------------------------
# small helpers
# ----------------------------------------------------------------------------
def _vmem_limit_bytes():
    try:
        cap = int(pltpu.get_tpu_info().vmem_capacity_bytes)
    except Exception:
        cap = 64 * 1024 * 1024
    return max(32 * 1024 * 1024, min(cap // 2, 100 * 1024 * 1024))


def _pick_m_tile(M, K, n_out, budget):
    """Largest M-tile (divisor of M) whose pipelined footprint fits the budget."""
    cands = [t for t in (2048, 1024, 512, 256, 128, 64, 32, 16, 8) if M % t == 0]
    for tm in cands:
        need = (2 * (tm * K * 4 + tm * n_out * 2 * 2)      # dbl-buffered x + bf16 outs
                + K * n_out * 2                            # resident bf16 weight
                + 8 * (K + n_out) * 4)                     # affines + slack
        if need <= 0.6 * budget:
            return tm
    return cands[-1] if cands else M


def _pick_h_tile(H, cap=8):
    """Divisor of H, >= 2 (needed for the +1-block halo trick), preferably <= cap."""
    divs = [d for d in range(1, H + 1) if H % d == 0]
    good = [d for d in divs if 2 <= d <= cap]
    if good:
        return max(good)
    bigger = [d for d in divs if d >= 2]
    return min(bigger) if bigger else H


def _bn_fold(gamma, beta, mean, var):
    scale = gamma / jnp.sqrt(var + BN_EPS)
    shift = beta - mean * scale
    return scale, shift


# ----------------------------------------------------------------------------
# Kernel A: relu(bn1(x)) -> [shortcut conv1x1 | conv1 1x1 -> bn2 -> relu]
# ----------------------------------------------------------------------------
def _preact_conv1_kernel(x_ref, w_ref, s1_ref, b1_ref, s2_ref, b2_ref,
                         sc_ref, o1_ref, *, n_sc):
    x = x_ref[...].astype(jnp.float32)
    x = jnp.maximum(x * s1_ref[...] + b1_ref[...], 0.0)            # relu(bn1(x))
    y = jnp.dot(x.astype(jnp.bfloat16), w_ref[...],
                preferred_element_type=jnp.float32)                # (tm, Cout+planes)
    sc_ref[...] = y[:, :n_sc].astype(sc_ref.dtype)
    o1 = y[:, n_sc:] * s2_ref[...] + b2_ref[...]
    o1_ref[...] = jnp.maximum(o1, 0.0).astype(o1_ref.dtype)


def fused_preact_conv1(x2d, prep):
    M, K = x2d.shape
    planes, Cout = prep["w3"].shape
    n_tot = Cout + planes
    limit = _vmem_limit_bytes()
    tm = _pick_m_tile(M, K, n_tot, limit)
    kernel = partial(_preact_conv1_kernel, n_sc=Cout)
    return pl.pallas_call(
        kernel,
        out_shape=(jax.ShapeDtypeStruct((M, Cout), jnp.bfloat16),
                   jax.ShapeDtypeStruct((M, planes), jnp.bfloat16)),
        grid=(M // tm,),
        in_specs=[
            pl.BlockSpec((tm, K), lambda i: (i, 0)),
            pl.BlockSpec((K, n_tot), lambda i: (0, 0)),
            pl.BlockSpec((1, K), lambda i: (0, 0)),
            pl.BlockSpec((1, K), lambda i: (0, 0)),
            pl.BlockSpec((1, planes), lambda i: (0, 0)),
            pl.BlockSpec((1, planes), lambda i: (0, 0)),
        ],
        out_specs=(pl.BlockSpec((tm, Cout), lambda i: (i, 0)),
                   pl.BlockSpec((tm, planes), lambda i: (i, 0))),
        compiler_params=pltpu.CompilerParams(
            dimension_semantics=("parallel",), vmem_limit_bytes=limit),
    )(x2d, prep["w_cat"], prep["s1"], prep["b1"], prep["s2"], prep["b2"])


# ----------------------------------------------------------------------------
# Kernel B: conv2 (3x3, halo tiles) -> bn3 -> relu -> conv3 (1x1)
#           + fused per-region average-pool accumulation
# ----------------------------------------------------------------------------
def _conv2_conv3_pool_kernel(x0_ref, x1_ref, w2_ref, s3_ref, b3_ref, w3_ref,
                             o3_ref, pool_ref, *, TH, W, h1, h2, H, inv_n):
    h = pl.program_id(1)

    @pl.when(h == 0)
    def _init():
        pool_ref[...] = jnp.zeros_like(pool_ref)

    cur = x0_ref[0]                                   # (TH, W+2, Cp) bf16
    nxt = x1_ref[0, 0:2]                              # (2,  W+2, Cp) bf16 halo rows
    rows = jnp.concatenate([cur, nxt], axis=0)        # (TH+2, W+2, Cp)

    Cp = cur.shape[-1]
    planes = w2_ref.shape[-1]

    acc = jnp.zeros((TH * W, planes), jnp.float32)
    for kh in range(3):
        for kw in range(3):
            patch = rows[kh:kh + TH, kw:kw + W, :].reshape(TH * W, Cp)
            acc += jnp.dot(patch, w2_ref[kh * 3 + kw],
                           preferred_element_type=jnp.float32)

    o2 = jnp.maximum(acc * s3_ref[...] + b3_ref[...], 0.0)         # relu(bn3(conv2))
    o3 = jnp.dot(o2.astype(jnp.bfloat16), w3_ref[...],
                 preferred_element_type=jnp.float32)               # (TH*W, Cout)
    Cout = o3.shape[-1]
    o3_ref[...] = o3.reshape(1, TH, W, Cout).astype(o3_ref.dtype)

    # region mean accumulation (scaled row sums -> resident (1, 3, Cout) block)
    row_sums = jnp.sum(o3.reshape(TH, W, Cout), axis=1)            # (TH, Cout) f32
    gidx = h * TH + jax.lax.broadcasted_iota(jnp.int32, (TH, 1), 0)
    for r, (lo, hi) in enumerate(((0, h1), (h1, h2), (h2, H))):
        m = jnp.logical_and(gidx >= lo, gidx < hi)
        contrib = jnp.sum(jnp.where(m, row_sums, 0.0), axis=0, keepdims=True)
        pool_ref[0, r:r + 1, :] += contrib * inv_n[r]


def conv2_conv3_pool(o1p, prep, *, B, H, W, TH, h1, h2):
    planes, Cout = prep["w3"].shape
    Wp = W + 2
    n_h = H // TH
    counts = (h1 * W, (h2 - h1) * W, (H - h2) * W)
    inv_n = tuple((1.0 / n) if n > 0 else 0.0 for n in counts)
    limit = _vmem_limit_bytes()
    kernel = partial(_conv2_conv3_pool_kernel, TH=TH, W=W,
                     h1=h1, h2=h2, H=H, inv_n=inv_n)
    return pl.pallas_call(
        kernel,
        out_shape=(jax.ShapeDtypeStruct((B, H, W, Cout), jnp.bfloat16),
                   jax.ShapeDtypeStruct((B, 3, Cout), jnp.float32)),
        grid=(B, n_h),
        in_specs=[
            pl.BlockSpec((1, TH, Wp, planes), lambda b, h: (b, h, 0, 0)),
            pl.BlockSpec((1, TH, Wp, planes), lambda b, h: (b, h + 1, 0, 0)),
            pl.BlockSpec((9, planes, planes), lambda b, h: (0, 0, 0)),
            pl.BlockSpec((1, planes), lambda b, h: (0, 0)),
            pl.BlockSpec((1, planes), lambda b, h: (0, 0)),
            pl.BlockSpec((planes, Cout), lambda b, h: (0, 0)),
        ],
        out_specs=(pl.BlockSpec((1, TH, W, Cout), lambda b, h: (b, h, 0, 0)),
                   pl.BlockSpec((1, 3, Cout), lambda b, h: (b, 0, 0))),
        compiler_params=pltpu.CompilerParams(
            dimension_semantics=("parallel", "arbitrary"),
            vmem_limit_bytes=limit),
    )(o1p, o1p, prep["w2r"], prep["s3"], prep["b3"], prep["w3"])


# ----------------------------------------------------------------------------
# Kernel C: SE gate  y -> relu(y @ Wse) -> @ Wfc2 -> softmax over 3 branches
# ----------------------------------------------------------------------------
def _se_gate_kernel(pool_ref, wse_ref, wfc2_ref, coef_ref, *, Cout):
    p = pool_ref[...]                                   # (B, 3, Cout) f32 (region means)
    y = p[:, 0, :] + p[:, 1, :] + p[:, 2, :]            # (B, Cout)
    z = jnp.maximum(jnp.dot(y, wse_ref[...],
                            preferred_element_type=jnp.float32), 0.0)
    logits = jnp.dot(z, wfc2_ref[...],
                     preferred_element_type=jnp.float32)            # (B, 3*Cout)
    a = logits[:, :Cout]
    b = logits[:, Cout:2 * Cout]
    c = logits[:, 2 * Cout:3 * Cout]
    m = jnp.maximum(jnp.maximum(a, b), c)
    ea, eb, ec = jnp.exp(a - m), jnp.exp(b - m), jnp.exp(c - m)
    inv = 1.0 / (ea + eb + ec)
    coef_ref[:, 0, :] = ea * inv
    coef_ref[:, 1, :] = eb * inv
    coef_ref[:, 2, :] = ec * inv


def se_gate(pool, prep):
    B = pool.shape[0]
    Cout = prep["w_se"].shape[0]
    vm = pl.BlockSpec(memory_space=pltpu.MemorySpace.VMEM)
    return pl.pallas_call(
        partial(_se_gate_kernel, Cout=Cout),
        out_shape=jax.ShapeDtypeStruct((B, 3, Cout), jnp.float32),
        in_specs=[vm, vm, vm],
        out_specs=vm,
    )(pool, prep["w_se"], prep["w_fc2"])


# ----------------------------------------------------------------------------
# Kernel D: per-region rescale + residual add
# ----------------------------------------------------------------------------
def _scale_add_kernel(o3_ref, sc_ref, coef_ref, out_ref, *, TH, h1, h2):
    h = pl.program_id(1)
    x = o3_ref[...].astype(jnp.float32)                 # (1, TH, W, Cout)
    s = sc_ref[...].astype(jnp.float32)
    c = coef_ref[...]                                   # (1, 3, Cout) f32
    gidx = h * TH + jax.lax.broadcasted_iota(jnp.int32, (TH, 1), 0)
    sel = jnp.where(gidx < h1, c[:, 0, :],
                    jnp.where(gidx < h2, c[:, 1, :], c[:, 2, :]))   # (TH, Cout)
    out_ref[...] = (x * sel[None, :, None, :] + s).astype(out_ref.dtype)


def scale_add(o3, shortcut, coef, *, h1, h2):
    B, H, W, Cout = o3.shape
    TH = _pick_h_tile(H, cap=8)
    limit = _vmem_limit_bytes()
    return pl.pallas_call(
        partial(_scale_add_kernel, TH=TH, h1=h1, h2=h2),
        out_shape=jax.ShapeDtypeStruct((B, H, W, Cout), jnp.float32),
        grid=(B, H // TH),
        in_specs=[
            pl.BlockSpec((1, TH, W, Cout), lambda b, h: (b, h, 0, 0)),
            pl.BlockSpec((1, TH, W, Cout), lambda b, h: (b, h, 0, 0)),
            pl.BlockSpec((1, 3, Cout), lambda b, h: (b, 0, 0)),
        ],
        out_specs=pl.BlockSpec((1, TH, W, Cout), lambda b, h: (b, h, 0, 0)),
        compiler_params=pltpu.CompilerParams(
            dimension_semantics=("parallel", "parallel"),
            vmem_limit_bytes=limit),
    )(o3, shortcut, coef)


# ----------------------------------------------------------------------------
# One-time parameter prep (BN folding, weight transposes, bf16 casts)
# ----------------------------------------------------------------------------
def prepare_params(params):
    planes = params["w1"].shape[0]
    s1, b1 = _bn_fold(*params["bn1"])
    s2, b2 = _bn_fold(*params["bn2"])
    s3, b3 = _bn_fold(*params["bn3"])
    w_sc = params["w_sc"][:, :, 0, 0].T                       # (Cin, Cout)
    w1 = params["w1"][:, :, 0, 0].T                           # (Cin, planes)
    return {
        "s1": s1.reshape(1, -1).astype(jnp.float32),
        "b1": b1.reshape(1, -1).astype(jnp.float32),
        "s2": s2.reshape(1, -1).astype(jnp.float32),
        "b2": b2.reshape(1, -1).astype(jnp.float32),
        "s3": s3.reshape(1, -1).astype(jnp.float32),
        "b3": b3.reshape(1, -1).astype(jnp.float32),
        "w_cat": jnp.concatenate([w_sc, w1], axis=1).astype(jnp.bfloat16),
        "w2r": jnp.transpose(params["w2"], (2, 3, 1, 0))
                  .reshape(9, planes, planes).astype(jnp.bfloat16),
        "w3": params["w3"][:, :, 0, 0].T.astype(jnp.bfloat16),     # (planes, Cout)
        "w_se": params["w_se"][:, :, 0, 0].T.astype(jnp.float32),  # (Cout, d)
        "w_fc2": params["w_fc2"][:, :, 0, 0].T.astype(jnp.float32),  # (d, 3*Cout)
    }


# ----------------------------------------------------------------------------
# Module forward (glue + Pallas calls)
# ----------------------------------------------------------------------------
def se_preact_bottleneck_forward(x_nchw, prep):
    B, Cin, H, W = x_nchw.shape
    assert H >= 3, "SKFusion splits H into thirds; need H >= 3"
    planes, Cout = prep["w3"].shape
    h1, h2 = H // 3, H * 2 // 3

    x = jnp.transpose(x_nchw, (0, 2, 3, 1)).astype(jnp.float32)    # NHWC
    x2d = x.reshape(B * H * W, Cin)

    # fused pre-act + shortcut conv + conv1/bn2/relu (bf16 outputs)
    shortcut2d, o1_2d = fused_preact_conv1(x2d, prep)
    shortcut = shortcut2d.reshape(B, H, W, Cout)
    o1 = o1_2d.reshape(B, H, W, planes)

    # conv2(3x3) + bn3 + relu + conv3 + fused region pool
    TH = _pick_h_tile(H, cap=8)
    # spatial pad for the 3x3 conv; bottom padded to a full extra H-block so the
    # (h+1) halo block always exists.
    o1p = jnp.pad(o1, ((0, 0), (1, TH - 1), (1, 1), (0, 0)))
    o3, pool = conv2_conv3_pool(o1p, prep, B=B, H=H, W=W, TH=TH, h1=h1, h2=h2)

    # SE gate -> (B, 3, Cout) softmax coefficients
    coef = se_gate(pool, prep)

    # per-region rescale + residual add, back to NCHW
    out = scale_add(o3, shortcut, coef, h1=h1, h2=h2)
    return jnp.transpose(out, (0, 3, 1, 2))


# ----------------------------------------------------------------------------
# Deterministic parameter init (shapes from __init__)
# ----------------------------------------------------------------------------
def init_params(key, in_planes, planes):
    Cout = EXPANSION * planes
    C = Cout                      # channels entering SKFusion (see TODO above)
    d = max(C // 16, 32)
    ks = jax.random.split(key, 9)

    def bn_params(k, n):
        k1, k2, k3, k4 = jax.random.split(k, 4)
        gamma = 1.0 + 0.1 * jax.random.normal(k1, (n,), jnp.float32)
        beta = 0.1 * jax.random.normal(k2, (n,), jnp.float32)
        mean = 0.1 * jax.random.normal(k3, (n,), jnp.float32)
        var = 1.0 + 0.1 * jax.random.uniform(k4, (n,), jnp.float32)
        return (gamma, beta, mean, var)

    return {
        "bn1": bn_params(ks[0], in_planes),
        "w1": 0.2 * jax.random.normal(ks[1], (planes, in_planes, 1, 1), jnp.float32),
        "bn2": bn_params(ks[2], planes),
        "w2": 0.2 * jax.random.normal(ks[3], (planes, planes, 3, 3), jnp.float32),
        "bn3": bn_params(ks[4], planes),
        "w3": 0.2 * jax.random.normal(ks[5], (Cout, planes, 1, 1), jnp.float32),
        "w_sc": 0.2 * jax.random.normal(ks[6], (Cout, in_planes, 1, 1), jnp.float32),
        "w_se": 0.2 * jax.random.normal(ks[7], (d, C, 1, 1), jnp.float32),
        "w_fc2": 0.2 * jax.random.normal(ks[8], (3 * C, d, 1, 1), jnp.float32),
    }


# ----------------------------------------------------------------------------
# Pure-JAX reference (NCHW, mirrors the PyTorch forward)
# ----------------------------------------------------------------------------
def reference_forward(x, p):
    hi = jax.lax.Precision.HIGHEST

    def bn(v, bp):
        g, b, m, var = bp
        sc = g / jnp.sqrt(var + BN_EPS)
        return v * sc[None, :, None, None] + (b - m * sc)[None, :, None, None]

    def conv(v, w, pad=0):
        return jax.lax.conv_general_dilated(
            v, w, (1, 1), [(pad, pad), (pad, pad)],
            dimension_numbers=("NCHW", "OIHW", "NCHW"), precision=hi)

    out = jax.nn.relu(bn(x, p["bn1"]))
    shortcut = conv(out, p["w_sc"])
    o = conv(out, p["w1"])
    o = conv(jax.nn.relu(bn(o, p["bn2"])), p["w2"], pad=1)
    o = conv(jax.nn.relu(bn(o, p["bn3"])), p["w3"])

    B, C, H, W = o.shape
    h1, h2 = H // 3, H * 2 // 3
    x1, x2, x3 = o[:, :, :h1], o[:, :, h1:h2], o[:, :, h2:]
    y = x1.mean((2, 3)) + x3.mean((2, 3)) + x2.mean((2, 3))
    z = jax.nn.relu(jnp.einsum("bc,dc->bd", y, p["w_se"][:, :, 0, 0], precision=hi))
    abc = jnp.einsum("bd,od->bo", z, p["w_fc2"][:, :, 0, 0], precision=hi)
    abc = jax.nn.softmax(abc.reshape(B, 3, C, 1), axis=1)
    a, b_, c = (abc[:, i, :, 0] for i in range(3))
    y = jnp.concatenate([a[:, :, None, None] * x1,
                         b_[:, :, None, None] * x2,
                         c[:, :, None, None] * x3], axis=2)
    return y + shortcut


if __name__ == "__main__":
    key = jax.random.PRNGKey(0)
    k_x, k_p = jax.random.split(key)
    B, in_planes, planes, H, W = 2, 16, 8, 12, 8
    x = jax.random.normal(k_x, (B, in_planes, H, W), jnp.float32)
    params = init_params(k_p, in_planes, planes)
    prep = prepare_params(params)

    fwd = jax.jit(se_preact_bottleneck_forward)
    out = jax.block_until_ready(fwd(x, prep))
    ref = jax.block_until_ready(reference_forward(x, params))
    # bf16 weights / bf16 HBM intermediates -> slightly looser tolerance than f32
    np.testing.assert_allclose(np.asarray(out), np.asarray(ref),
                               rtol=3e-2, atol=3e-2)
    print("KERNEL_OK")
</pallas_src>

<mosaic_0001>
module attributes {stable_mosaic.version = 11 : i64} {
  func.func @_conv2_conv3_pool_kernel(%arg0: i32, %arg1: i32, %arg2: memref<1x6x10x8xbf16, #tpu.memory_space<vmem>>, %arg3: memref<1x6x10x8xbf16, #tpu.memory_space<vmem>>, %arg4: memref<9x8x8xbf16, #tpu.memory_space<vmem>>, %arg5: memref<1x8xf32, #tpu.memory_space<vmem>>, %arg6: memref<1x8xf32, #tpu.memory_space<vmem>>, %arg7: memref<8x32xbf16, #tpu.memory_space<vmem>>, %arg8: memref<1x6x8x32xbf16, #tpu.memory_space<vmem>>, %arg9: memref<1x3x32xf32, #tpu.memory_space<vmem>>) attributes {dimension_semantics = [#tpu.dimension_semantics<parallel>, #tpu.dimension_semantics<arbitrary>], iteration_bounds = array<i64: 2, 2>, scalar_prefetch = 0 : i64, scratch_operands = 0 : i64, tpu.core_type = #tpu.core_type<tc>, window_params = [{transform_indices = @transform_0, window_bounds = array<i64: 1, 6, 10, 8>}, {transform_indices = @transform_1, window_bounds = array<i64: 1, 6, 10, 8>}, {pipeline_mode = #tpu.pipeline_mode<synchronous>, transform_indices = @transform_2, window_bounds = array<i64: 9, 8, 8>}, {pipeline_mode = #tpu.pipeline_mode<synchronous>, transform_indices = @transform_3, window_bounds = array<i64: 1, 8>}, {pipeline_mode = #tpu.pipeline_mode<synchronous>, transform_indices = @transform_4, window_bounds = array<i64: 1, 8>}, {pipeline_mode = #tpu.pipeline_mode<synchronous>, transform_indices = @transform_5, window_bounds = array<i64: 8, 32>}, {transform_indices = @transform_6, window_bounds = array<i64: 1, 6, 8, 32>}, {transform_indices = @transform_7, window_bounds = array<i64: 1, 3, 32>}]} {
    %c0_i32 = arith.constant 0 : i32
    %0 = arith.cmpi eq, %arg1, %c0_i32 : i32
    %1 = arith.extui %0 : i1 to i32
    %c0_i32_0 = arith.constant 0 : i32
    %2 = arith.cmpi ne, %1, %c0_i32_0 : i32
    scf.if %2 {
      %cst_79 = arith.constant 0.000000e+00 : f32
      %140 = vector.broadcast %cst_79 : f32 to vector<1x3x32xf32>
      %c0_80 = arith.constant 0 : index
      %c0_81 = arith.constant 0 : index
      %c0_82 = arith.constant 0 : index
      %141 = vector.load %arg9[%c0_80, %c0_81, %c0_82] : memref<1x3x32xf32, #tpu.memory_space<vmem>>, vector<1x3x32xf32>
      tpu.vector_store %arg9[%c0_80, %c0_81, %c0_82], %140 {strides = array<i32>} : memref<1x3x32xf32, #tpu.memory_space<vmem>>, vector<1x3x32xf32>,
    } else {
    }
    %c0 = arith.constant 0 : index
    %c0_1 = arith.constant 0 : index
    %c0_2 = arith.constant 0 : index
    %c0_3 = arith.constant 0 : index
    %3 = vector.load %arg2[%c0, %c0_1, %c0_2, %c0_3] : memref<1x6x10x8xbf16, #tpu.memory_space<vmem>>, vector<1x6x10x8xbf16>
    %4 = vector.shape_cast %3 : vector<1x6x10x8xbf16> to vector<6x10x8xbf16>
    %c0_4 = arith.constant 0 : index
    %c0_5 = arith.constant 0 : index
    %c0_6 = arith.constant 0 : index
    %c0_7 = arith.constant 0 : index
    %5 = vector.load %arg3[%c0_4, %c0_5, %c0_6, %c0_7] : memref<1x6x10x8xbf16, #tpu.memory_space<vmem>>, vector<1x2x10x8xbf16>
    %6 = vector.shape_cast %5 : vector<1x2x10x8xbf16> to vector<2x10x8xbf16>
    %7 = tpu.concatenate %4, %6 in 0 : vector<6x10x8xbf16>, vector<2x10x8xbf16> -> vector<8x10x8xbf16>
    %cst = arith.constant 0.000000e+00 : f32
    %8 = vector.broadcast %cst : f32 to vector<48x8xf32>
    %9 = vector.extract_strided_slice %7 {offsets = [0, 0, 0], sizes = [6, 8, 8], strides = [1, 1, 1]} : vector<8x10x8xbf16> to vector<6x8x8xbf16>
    %10 = vector.shape_cast %9 : vector<6x8x8xbf16> to vector<48x8xbf16>
    %c0_8 = arith.constant 0 : index
    %c0_9 = arith.constant 0 : index
    %c0_10 = arith.constant 0 : index
    %11 = vector.load %arg4[%c0_8, %c0_9, %c0_10] : memref<9x8x8xbf16, #tpu.memory_space<vmem>>, vector<1x8x8xbf16>
    %12 = vector.shape_cast %11 : vector<1x8x8xbf16> to vector<8x8xbf16>
    %cst_11 = arith.constant dense<0.000000e+00> : vector<48x8xf32>
    %13 = tpu.matmul %10, %12, %cst_11 {dimension_numbers = #tpu.dot_dimension_numbers<[1], [0], [0], [1], [0, 0, 1, 1], [], []>} : vector<48x8xbf16>, vector<8x8xbf16>, vector<48x8xf32> -> vector<48x8xf32>
    %14 = arith.addf %8, %13 : vector<48x8xf32>
    %15 = vector.extract_strided_slice %7 {offsets = [0, 1, 0], sizes = [6, 8, 8], strides = [1, 1, 1]} : vector<8x10x8xbf16> to vector<6x8x8xbf16>
    %16 = vector.shape_cast %15 : vector<6x8x8xbf16> to vector<48x8xbf16>
    %c1 = arith.constant 1 : index
    %c0_12 = arith.constant 0 : index
    %c0_13 = arith.constant 0 : index
    %17 = vector.load %arg4[%c1, %c0_12, %c0_13] : memref<9x8x8xbf16, #tpu.memory_space<vmem>>, vector<1x8x8xbf16>
    %18 = vector.shape_cast %17 : vector<1x8x8xbf16> to vector<8x8xbf16>
    %cst_14 = arith.constant dense<0.000000e+00> : vector<48x8xf32>
    %19 = tpu.matmul %16, %18, %cst_14 {dimension_numbers = #tpu.dot_dimension_numbers<[1], [0], [0], [1], [0, 0, 1, 1], [], []>} : vector<48x8xbf16>, vector<8x8xbf16>, vector<48x8xf32> -> vector<48x8xf32>
    %20 = arith.addf %14, %19 : vector<48x8xf32>
    %21 = vector.extract_strided_slice %7 {offsets = [0, 2, 0], sizes = [6, 8, 8], strides = [1, 1, 1]} : vector<8x10x8xbf16> to vector<6x8x8xbf16>
    %22 = vector.shape_cast %21 : vector<6x8x8xbf16> to vector<48x8xbf16>
    %c2 = arith.constant 2 : index
    %c0_15 = arith.constant 0 : index
    %c0_16 = arith.constant 0 : index
    %23 = vector.load %arg4[%c2, %c0_15, %c0_16] : memref<9x8x8xbf16, #tpu.memory_space<vmem>>, vector<1x8x8xbf16>
    %24 = vector.shape_cast %23 : vector<1x8x8xbf16> to vector<8x8xbf16>
    %cst_17 = arith.constant dense<0.000000e+00> : vector<48x8xf32>
    %25 = tpu.matmul %22, %24, %cst_17 {dimension_numbers = #tpu.dot_dimension_numbers<[1], [0], [0], [1], [0, 0, 1, 1], [], []>} : vector<48x8xbf16>, vector<8x8xbf16>, vector<48x8xf32> -> vector<48x8xf32>
    %26 = arith.addf %20, %25 : vector<48x8xf32>
    %27 = vector.extract_strided_slice %7 {offsets = [1, 0, 0], sizes = [6, 8, 8], strides = [1, 1, 1]} : vector<8x10x8xbf16> to vector<6x8x8xbf16>
    %28 = vector.shape_cast %27 : vector<6x8x8xbf16> to vector<48x8xbf16>
    %c3 = arith.constant 3 : index
    %c0_18 = arith.constant 0 : index
    %c0_19 = arith.constant 0 : index
    %29 = vector.load %arg4[%c3, %c0_18, %c0_19] : memref<9x8x8xbf16, #tpu.memory_space<vmem>>, vector<1x8x8xbf16>
    %30 = vector.shape_cast %29 : vector<1x8x8xbf16> to vector<8x8xbf16>
    %cst_20 = arith.constant dense<0.000000e+00> : vector<48x8xf32>
    %31 = tpu.matmul %28, %30, %cst_20 {dimension_numbers = #tpu.dot_dimension_numbers<[1], [0], [0], [1], [0, 0, 1, 1], [], []>} : vector<48x8xbf16>, vector<8x8xbf16>, vector<48x8xf32> -> vector<48x8xf32>
    %32 = arith.addf %26, %31 : vector<48x8xf32>
    %33 = vector.extract_strided_slice %7 {offsets = [1, 1, 0], sizes = [6, 8, 8], strides = [1, 1, 1]} : vector<8x10x8xbf16> to vector<6x8x8xbf16>
    %34 = vector.shape_cast %33 : vector<6x8x8xbf16> to vector<48x8xbf16>
    %c4 = arith.constant 4 : index
    %c0_21 = arith.constant 0 : index
    %c0_22 = arith.constant 0 : index
    %35 = vector.load %arg4[%c4, %c0_21, %c0_22] : memref<9x8x8xbf16, #tpu.memory_space<vmem>>, vector<1x8x8xbf16>
    %36 = vector.shape_cast %35 : vector<1x8x8xbf16> to vector<8x8xbf16>
    %cst_23 = arith.constant dense<0.000000e+00> : vector<48x8xf32>
    %37 = tpu.matmul %34, %36, %cst_23 {dimension_numbers = #tpu.dot_dimension_numbers<[1], [0], [0], [1], [0, 0, 1, 1], [], []>} : vector<48x8xbf16>, vector<8x8xbf16>, vector<48x8xf32> -> vector<48x8xf32>
    %38 = arith.addf %32, %37 : vector<48x8xf32>
    %39 = vector.extract_strided_slice %7 {offsets = [1, 2, 0], sizes = [6, 8, 8], strides = [1, 1, 1]} : vector<8x10x8xbf16> to vector<6x8x8xbf16>
    %40 = vector.shape_cast %39 : vector<6x8x8xbf16> to vector<48x8xbf16>
    %c5 = arith.constant 5 : index
    %c0_24 = arith.constant 0 : index
    %c0_25 = arith.constant 0 : index
    %41 = vector.load %arg4[%c5, %c0_24, %c0_25] : memref<9x8x8xbf16, #tpu.memory_space<vmem>>, vector<1x8x8xbf16>
    %42 = vector.shape_cast %41 : vector<1x8x8xbf16> to vector<8x8xbf16>
    %cst_26 = arith.constant dense<0.000000e+00> : vector<48x8xf32>
    %43 = tpu.matmul %40, %42, %cst_26 {dimension_numbers = #tpu.dot_dimension_numbers<[1], [0], [0], [1], [0, 0, 1, 1], [], []>} : vector<48x8xbf16>, vector<8x8xbf16>, vector<48x8xf32> -> vector<48x8xf32>
    %44 = arith.addf %38, %43 : vector<48x8xf32>
    %45 = vector.extract_strided_slice %7 {offsets = [2, 0, 0], sizes = [6, 8, 8], strides = [1, 1, 1]} : vector<8x10x8xbf16> to vector<6x8x8xbf16>
    %46 = vector.shape_cast %45 : vector<6x8x8xbf16> to vector<48x8xbf16>
    %c6 = arith.constant 6 : index
    %c0_27 = arith.constant 0 : index
    %c0_28 = arith.constant 0 : index
    %47 = vector.load %arg4[%c6, %c0_27, %c0_28] : memref<9x8x8xbf16, #tpu.memory_space<vmem>>, vector<1x8x8xbf16>
    %48 = vector.shape_cast %47 : vector<1x8x8xbf16> to vector<8x8xbf16>
    %cst_29 = arith.constant dense<0.000000e+00> : vector<48x8xf32>
    %49 = tpu.matmul %46, %48, %cst_29 {dimension_numbers = #tpu.dot_dimension_numbers<[1], [0], [0], [1], [0, 0, 1, 1], [], []>} : vector<48x8xbf16>, vector<8x8xbf16>, vector<48x8xf32> -> vector<48x8xf32>
    %50 = arith.addf %44, %49 : vector<48x8xf32>
    %51 = vector.extract_strided_slice %7 {offsets = [2, 1, 0], sizes = [6, 8, 8], strides = [1, 1, 1]} : vector<8x10x8xbf16> to vector<6x8x8xbf16>
    %52 = vector.shape_cast %51 : vector<6x8x8xbf16> to vector<48x8xbf16>
    %c7 = arith.constant 7 : index
    %c0_30 = arith.constant 0 : index
    %c0_31 = arith.constant 0 : index
    %53 = vector.load %arg4[%c7, %c0_30, %c0_31] : memref<9x8x8xbf16, #tpu.memory_space<vmem>>, vector<1x8x8xbf16>
    %54 = vector.shape_cast %53 : vector<1x8x8xbf16> to vector<8x8xbf16>
    %cst_32 = arith.constant dense<0.000000e+00> : vector<48x8xf32>
    %55 = tpu.matmul %52, %54, %cst_32 {dimension_numbers = #tpu.dot_dimension_numbers<[1], [0], [0], [1], [0, 0, 1, 1], [], []>} : vector<48x8xbf16>, vector<8x8xbf16>, vector<48x8xf32> -> vector<48x8xf32>
    %56 = arith.addf %50, %55 : vector<48x8xf32>
    %57 = vector.extract_strided_slice %7 {offsets = [2, 2, 0], sizes = [6, 8, 8], strides = [1, 1, 1]} : vector<8x10x8xbf16> to vector<6x8x8xbf16>
    %58 = vector.shape_cast %57 : vector<6x8x8xbf16> to vector<48x8xbf16>
    %c8 = arith.constant 8 : index
    %c0_33 = arith.constant 0 : index
    %c0_34 = arith.constant 0 : index
    %59 = vector.load %arg4[%c8, %c0_33, %c0_34] : memref<9x8x8xbf16, #tpu.memory_space<vmem>>, vector<1x8x8xbf16>
    %60 = vector.shape_cast %59 : vector<1x8x8xbf16> to vector<8x8xbf16>
    %cst_35 = arith.constant dense<0.000000e+00> : vector<48x8xf32>
    %61 = tpu.matmul %58, %60, %cst_35 {dimension_numbers = #tpu.dot_dimension_numbers<[1], [0], [0], [1], [0, 0, 1, 1], [], []>} : vector<48x8xbf16>, vector<8x8xbf16>, vector<48x8xf32> -> vector<48x8xf32>
    %62 = arith.addf %56, %61 : vector<48x8xf32>
    %c0_36 = arith.constant 0 : index
    %c0_37 = arith.constant 0 : index
    %63 = vector.load %arg5[%c0_36, %c0_37] : memref<1x8xf32, #tpu.memory_space<vmem>>, vector<1x8xf32>
    %64 = vector.broadcast %63 : vector<1x8xf32> to vector<48x8xf32>
    %65 = arith.mulf %62, %64 : vector<48x8xf32>
    %c0_38 = arith.constant 0 : index
    %c0_39 = arith.constant 0 : index
    %66 = vector.load %arg6[%c0_38, %c0_39] : memref<1x8xf32, #tpu.memory_space<vmem>>, vector<1x8xf32>
    %67 = vector.broadcast %66 : vector<1x8xf32> to vector<48x8xf32>
    %68 = arith.addf %65, %67 : vector<48x8xf32>
    %cst_40 = arith.constant 0.000000e+00 : f32
    %69 = vector.broadcast %cst_40 : f32 to vector<48x8xf32>
    %70 = arith.maximumf %68, %69 : vector<48x8xf32>
    %71 = arith.truncf %70 : vector<48x8xf32> to vector<48x8xbf16>
    %c0_41 = arith.constant 0 : index
    %c0_42 = arith.constant 0 : index
    %72 = vector.load %arg7[%c0_41, %c0_42] : memref<8x32xbf16, #tpu.memory_space<vmem>>, vector<8x32xbf16>
    %cst_43 = arith.constant dense<0.000000e+00> : vector<48x32xf32>
    %73 = tpu.matmul %71, %72, %cst_43 {dimension_numbers = #tpu.dot_dimension_numbers<[1], [0], [0], [1], [0, 0, 1, 1], [], []>} : vector<48x8xbf16>, vector<8x32xbf16>, vector<48x32xf32> -> vector<48x32xf32>
    %74 = vector.shape_cast %73 : vector<48x32xf32> to vector<1x6x8x32xf32>
    %75 = arith.truncf %74 : vector<1x6x8x32xf32> to vector<1x6x8x32xbf16>
    %c0_44 = arith.constant 0 : index
    %c0_45 = arith.constant 0 : index
    %c0_46 = arith.constant 0 : index
    %c0_47 = arith.constant 0 : index
    %76 = vector.load %arg8[%c0_44, %c0_45, %c0_46, %c0_47] : memref<1x6x8x32xbf16, #tpu.memory_space<vmem>>, vector<1x6x8x32xbf16>
    tpu.vector_store %arg8[%c0_44, %c0_45, %c0_46, %c0_47], %75 {strides = array<i32>} : memref<1x6x8x32xbf16, #tpu.memory_space<vmem>>, vector<1x6x8x32xbf16>,
    %77 = vector.shape_cast %73 : vector<48x32xf32> to vector<6x8x32xf32>
    %cst_48 = arith.constant dense<0.000000e+00> : vector<6x32xf32>
    %78 = vector.multi_reduction <add>, %77, %cst_48 [1] : vector<6x8x32xf32> to vector<6x32xf32>
    %c6_i32 = arith.constant 6 : i32
    %79 = arith.muli %arg1, %c6_i32 : i32
    %80 = tpu.iota {dimensions = array<i32: 0>} : vector<6x1xi32>
    %81 = vector.broadcast %79 : i32 to vector<6x1xi32>
    %82 = arith.addi %81, %80 : vector<6x1xi32>
    %c0_i32_49 = arith.constant 0 : i32
    %83 = vector.broadcast %c0_i32_49 : i32 to vector<6x1xi32>
    %84 = arith.cmpi sge, %82, %83 : vector<6x1xi32>
    %c4_i32 = arith.constant 4 : i32
    %85 = vector.broadcast %c4_i32 : i32 to vector<6x1xi32>
    %86 = arith.cmpi slt, %82, %85 : vector<6x1xi32>
    %87 = arith.andi %84, %86 : vector<6x1xi1>
    %cst_50 = arith.constant 0.000000e+00 : f32
    %88 = vector.shape_cast %87 : vector<6x1xi1> to vector<6x1xi1>
    %89 = vector.broadcast %88 : vector<6x1xi1> to vector<6x32xi1>
    %90 = vector.broadcast %cst_50 : f32 to vector<6x32xf32>
    %91 = arith.select %89, %78, %90 : vector<6x32xi1>, vector<6x32xf32>
    %cst_51 = arith.constant dense<0.000000e+00> : vector<32xf32>
    %92 = vector.multi_reduction <add>, %91, %cst_51 [0] : vector<6x32xf32> to vector<32xf32>
    %93 = vector.shape_cast %92 : vector<32xf32> to vector<1x32xf32>
    %c0_52 = arith.constant 0 : index
    %c0_53 = arith.constant 0 : index
    %c0_54 = arith.constant 0 : index
    %94 = vector.load %arg9[%c0_52, %c0_53, %c0_54] : memref<1x3x32xf32, #tpu.memory_space<vmem>>, vector<1x1x32xf32>
    %95 = vector.shape_cast %94 : vector<1x1x32xf32> to vector<1x32xf32>
    %cst_55 = arith.constant 3.125000e-02 : f32
    %96 = vector.broadcast %cst_55 : f32 to vector<1x32xf32>
    %97 = arith.mulf %93, %96 : vector<1x32xf32>
    %98 = arith.addf %95, %97 : vector<1x32xf32>
    %c0_56 = arith.constant 0 : index
    %c0_57 = arith.constant 0 : index
    %c0_58 = arith.constant 0 : index
    %99 = vector.load %arg9[%c0_56, %c0_57, %c0_58] : memref<1x3x32xf32, #tpu.memory_space<vmem>>, vector<1x1x32xf32>
    %100 = vector.shape_cast %99 : vector<1x1x32xf32> to vector<1x32xf32>
    %101 = vector.shape_cast %98 : vector<1x32xf32> to vector<1x1x32xf32>
    tpu.vector_store %arg9[%c0_56, %c0_57, %c0_58], %101 {strides = array<i32>} : memref<1x3x32xf32, #tpu.memory_space<vmem>>, vector<1x1x32xf32>,
    %c4_i32_59 = arith.constant 4 : i32
    %102 = vector.broadcast %c4_i32_59 : i32 to vector<6x1xi32>
    %103 = arith.cmpi sge, %82, %102 : vector<6x1xi32>
    %c8_i32 = arith.constant 8 : i32
    %104 = vector.broadcast %c8_i32 : i32 to vector<6x1xi32>
    %105 = arith.cmpi slt, %82, %104 : vector<6x1xi32>
    %106 = arith.andi %103, %105 : vector<6x1xi1>
    %cst_60 = arith.constant 0.000000e+00 : f32
    %107 = vector.shape_cast %106 : vector<6x1xi1> to vector<6x1xi1>
    %108 = vector.broadcast %107 : vector<6x1xi1> to vector<6x32xi1>
    %109 = vector.broadcast %cst_60 : f32 to vector<6x32xf32>
    %110 = arith.select %108, %78, %109 : vector<6x32xi1>, vector<6x32xf32>
    %cst_61 = arith.constant dense<0.000000e+00> : vector<32xf32>
    %111 = vector.multi_reduction <add>, %110, %cst_61 [0] : vector<6x32xf32> to vector<32xf32>
    %112 = vector.shape_cast %111 : vector<32xf32> to vector<1x32xf32>
    %c0_62 = arith.constant 0 : index
    %c1_63 = arith.constant 1 : index
    %c0_64 = arith.constant 0 : index
    %113 = vector.load %arg9[%c0_62, %c1_63, %c0_64] : memref<1x3x32xf32, #tpu.memory_space<vmem>>, vector<1x1x32xf32>
    %114 = vector.shape_cast %113 : vector<1x1x32xf32> to vector<1x32xf32>
    %cst_65 = arith.constant 3.125000e-02 : f32
    %115 = vector.broadcast %cst_65 : f32 to vector<1x32xf32>
    %116 = arith.mulf %112, %115 : vector<1x32xf32>
    %117 = arith.addf %114, %116 : vector<1x32xf32>
    %c0_66 = arith.constant 0 : index
    %c1_67 = arith.constant 1 : index
    %c0_68 = arith.constant 0 : index
    %118 = vector.load %arg9[%c0_66, %c1_67, %c0_68] : memref<1x3x32xf32, #tpu.memory_space<vmem>>, vector<1x1x32xf32>
    %119 = vector.shape_cast %118 : vector<1x1x32xf32> to vector<1x32xf32>
    %120 = vector.shape_cast %117 : vector<1x32xf32> to vector<1x1x32xf32>
    tpu.vector_store %arg9[%c0_66, %c1_67, %c0_68], %120 {strides = array<i32>} : memref<1x3x32xf32, #tpu.memory_space<vmem>>, vector<1x1x32xf32>,
    %c8_i32_69 = arith.constant 8 : i32
    %121 = vector.broadcast %c8_i32_69 : i32 to vector<6x1xi32>
    %122 = arith.cmpi sge, %82, %121 : vector<6x1xi32>
    %c12_i32 = arith.constant 12 : i32
    %123 = vector.broadcast %c12_i32 : i32 to vector<6x1xi32>
    %124 = arith.cmpi slt, %82, %123 : vector<6x1xi32>
    %125 = arith.andi %122, %124 : vector<6x1xi1>
    %cst_70 = arith.constant 0.000000e+00 : f32
    %126 = vector.shape_cast %125 : vector<6x1xi1> to vector<6x1xi1>
    %127 = vector.broadcast %126 : vector<6x1xi1> to vector<6x32xi1>
    %128 = vector.broadcast %cst_70 : f32 to vector<6x32xf32>
    %129 = arith.select %127, %78, %128 : vector<6x32xi1>, vector<6x32xf32>
    %cst_71 = arith.constant dense<0.000000e+00> : vector<32xf32>
    %130 = vector.multi_reduction <add>, %129, %cst_71 [0] : vector<6x32xf32> to vector<32xf32>
    %131 = vector.shape_cast %130 : vector<32xf32> to vector<1x32xf32>
    %c0_72 = arith.constant 0 : index
    %c2_73 = arith.constant 2 : index
    %c0_74 = arith.constant 0 : index
    %132 = vector.load %arg9[%c0_72, %c2_73, %c0_74] : memref<1x3x32xf32, #tpu.memory_space<vmem>>, vector<1x1x32xf32>
    %133 = vector.shape_cast %132 : vector<1x1x32xf32> to vector<1x32xf32>
    %cst_75 = arith.constant 3.125000e-02 : f32
    %134 = vector.broadcast %cst_75 : f32 to vector<1x32xf32>
    %135 = arith.mulf %131, %134 : vector<1x32xf32>
    %136 = arith.addf %133, %135 : vector<1x32xf32>
    %c0_76 = arith.constant 0 : index
    %c2_77 = arith.constant 2 : index
    %c0_78 = arith.constant 0 : index
    %137 = vector.load %arg9[%c0_76, %c2_77, %c0_78] : memref<1x3x32xf32, #tpu.memory_space<vmem>>, vector<1x1x32xf32>
    %138 = vector.shape_cast %137 : vector<1x1x32xf32> to vector<1x32xf32>
    %139 = vector.shape_cast %136 : vector<1x32xf32> to vector<1x1x32xf32>
    tpu.vector_store %arg9[%c0_76, %c2_77, %c0_78], %139 {strides = array<i32>} : memref<1x3x32xf32, #tpu.memory_space<vmem>>, vector<1x1x32xf32>,
    return
  }
  func.func @transform_0(%arg0: i32, %arg1: i32) -> (i32, i32, i32, i32) {
    %c0_i32 = arith.constant 0 : i32
    %c0_i32_0 = arith.constant 0 : i32
    %c0_i32_1 = arith.constant 0 : i32
    return %arg0, %arg1, %c0_i32, %c0_i32_0 : i32, i32, i32, i32
  }
  func.func @transform_1(%arg0: i32, %arg1: i32) -> (i32, i32, i32, i32) {
    %c1_i32 = arith.constant 1 : i32
    %0 = arith.addi %arg1, %c1_i32 : i32
    %c0_i32 = arith.constant 0 : i32
    %c0_i32_0 = arith.constant 0 : i32
    %c0_i32_1 = arith.constant 0 : i32
    return %arg0, %0, %c0_i32, %c0_i32_0 : i32, i32, i32, i32
  }
  func.func @transform_2(%arg0: i32, %arg1: i32) -> (i32, i32, i32) {
    %c0_i32 = arith.constant 0 : i32
    %c0_i32_0 = arith.constant 0 : i32
    %c0_i32_1 = arith.constant 0 : i32
    %c0_i32_2 = arith.constant 0 : i32
    return %c0_i32, %c0_i32_0, %c0_i32_1 : i32, i32, i32
  }
  func.func @transform_3(%arg0: i32, %arg1: i32) -> (i32, i32) {
    %c0_i32 = arith.constant 0 : i32
    %c0_i32_0 = arith.constant 0 : i32
    %c0_i32_1 = arith.constant 0 : i32
    return %c0_i32, %c0_i32_0 : i32, i32
  }
  func.func @transform_4(%arg0: i32, %arg1: i32) -> (i32, i32) {
    %c0_i32 = arith.constant 0 : i32
    %c0_i32_0 = arith.constant 0 : i32
    %c0_i32_1 = arith.constant 0 : i32
    return %c0_i32, %c0_i32_0 : i32, i32
  }
  func.func @transform_5(%arg0: i32, %arg1: i32) -> (i32, i32) {
    %c0_i32 = arith.constant 0 : i32
    %c0_i32_0 = arith.constant 0 : i32
    %c0_i32_1 = arith.constant 0 : i32
    return %c0_i32, %c0_i32_0 : i32, i32
  }
  func.func @transform_6(%arg0: i32, %arg1: i32) -> (i32, i32, i32, i32) {
    %c0_i32 = arith.constant 0 : i32
    %c0_i32_0 = arith.constant 0 : i32
    %c0_i32_1 = arith.constant 0 : i32
    return %arg0, %arg1, %c0_i32, %c0_i32_0 : i32, i32, i32, i32
  }
  func.func @transform_7(%arg0: i32, %arg1: i32) -> (i32, i32, i32) {
    %c0_i32 = arith.constant 0 : i32
    %c0_i32_0 = arith.constant 0 : i32
    %c0_i32_1 = arith.constant 0 : i32
    return %arg0, %c0_i32, %c0_i32_0 : i32, i32, i32
  }
}

module attributes {stable_mosaic.version = 11 : i64} {
  func.func @_preact_conv1_kernel(%arg0: i32, %arg1: memref<64x16xf32, #tpu.memory_space<vmem>>, %arg2: memref<16x40xbf16, #tpu.memory_space<vmem>>, %arg3: memref<1x16xf32, #tpu.memory_space<vmem>>, %arg4: memref<1x16xf32, #tpu.memory_space<vmem>>, %arg5: memref<1x8xf32, #tpu.memory_space<vmem>>, %arg6: memref<1x8xf32, #tpu.memory_space<vmem>>, %arg7: memref<64x32xbf16, #tpu.memory_space<vmem>>, %arg8: memref<64x8xbf16, #tpu.memory_space<vmem>>) attributes {dimension_semantics = [#tpu.dimension_semantics<parallel>], iteration_bounds = array<i64: 3>, scalar_prefetch = 0 : i64, scratch_operands = 0 : i64, tpu.core_type = #tpu.core_type<tc>, window_params = [{transform_indices = @transform_0, window_bounds = array<i64: 64, 16>}, {pipeline_mode = #tpu.pipeline_mode<synchronous>, transform_indices = @transform_1, window_bounds = array<i64: 16, 40>}, {pipeline_mode = #tpu.pipeline_mode<synchronous>, transform_indices = @transform_2, window_bounds = array<i64: 1, 16>}, {pipeline_mode = #tpu.pipeline_mode<synchronous>, transform_indices = @transform_3, window_bounds = array<i64: 1, 16>}, {pipeline_mode = #tpu.pipeline_mode<synchronous>, transform_indices = @transform_4, window_bounds = array<i64: 1, 8>}, {pipeline_mode = #tpu.pipeline_mode<synchronous>, transform_indices = @transform_5, window_bounds = array<i64: 1, 8>}, {transform_indices = @transform_6, window_bounds = array<i64: 64, 32>}, {transform_indices = @transform_7, window_bounds = array<i64: 64, 8>}]} {
    %c0 = arith.constant 0 : index
    %c0_0 = arith.constant 0 : index
    %0 = vector.load %arg1[%c0, %c0_0] : memref<64x16xf32, #tpu.memory_space<vmem>>, vector<64x16xf32>
    %c0_1 = arith.constant 0 : index
    %c0_2 = arith.constant 0 : index
    %1 = vector.load %arg3[%c0_1, %c0_2] : memref<1x16xf32, #tpu.memory_space<vmem>>, vector<1x16xf32>
    %2 = vector.broadcast %1 : vector<1x16xf32> to vector<64x16xf32>
    %3 = arith.mulf %0, %2 : vector<64x16xf32>
    %c0_3 = arith.constant 0 : index
    %c0_4 = arith.constant 0 : index
    %4 = vector.load %arg4[%c0_3, %c0_4] : memref<1x16xf32, #tpu.memory_space<vmem>>, vector<1x16xf32>
    %5 = vector.broadcast %4 : vector<1x16xf32> to vector<64x16xf32>
    %6 = arith.addf %3, %5 : vector<64x16xf32>
    %cst = arith.constant 0.000000e+00 : f32
    %7 = vector.broadcast %cst : f32 to vector<64x16xf32>
    %8 = arith.maximumf %6, %7 : vector<64x16xf32>
    %9 = arith.truncf %8 : vector<64x16xf32> to vector<64x16xbf16>
    %c0_5 = arith.constant 0 : index
    %c0_6 = arith.constant 0 : index
    %10 = vector.load %arg2[%c0_5, %c0_6] : memref<16x40xbf16, #tpu.memory_space<vmem>>, vector<16x40xbf16>
    %cst_7 = arith.constant dense<0.000000e+00> : vector<64x40xf32>
    %11 = tpu.matmul %9, %10, %cst_7 {dimension_numbers = #tpu.dot_dimension_numbers<[1], [0], [0], [1], [0, 0, 1, 1], [], []>} : vector<64x16xbf16>, vector<16x40xbf16>, vector<64x40xf32> -> vector<64x40xf32>
    %12 = vector.extract_strided_slice %11 {offsets = [0, 0], sizes = [64, 32], strides = [1, 1]} : vector<64x40xf32> to vector<64x32xf32>
    %13 = arith.truncf %12 : vector<64x32xf32> to vector<64x32xbf16>
    %c0_8 = arith.constant 0 : index
    %c0_9 = arith.constant 0 : index
    %14 = vector.load %arg7[%c0_8, %c0_9] : memref<64x32xbf16, #tpu.memory_space<vmem>>, vector<64x32xbf16>
    tpu.vector_store %arg7[%c0_8, %c0_9], %13 {strides = array<i32>} : memref<64x32xbf16, #tpu.memory_space<vmem>>, vector<64x32xbf16>,
    %15 = vector.extract_strided_slice %11 {offsets = [0, 32], sizes = [64, 8], strides = [1, 1]} : vector<64x40xf32> to vector<64x8xf32>
    %c0_10 = arith.constant 0 : index
    %c0_11 = arith.constant 0 : index
    %16 = vector.load %arg5[%c0_10, %c0_11] : memref<1x8xf32, #tpu.memory_space<vmem>>, vector<1x8xf32>
    %17 = vector.broadcast %16 : vector<1x8xf32> to vector<64x8xf32>
    %18 = arith.mulf %15, %17 : vector<64x8xf32>
    %c0_12 = arith.constant 0 : index
    %c0_13 = arith.constant 0 : index
    %19 = vector.load %arg6[%c0_12, %c0_13] : memref<1x8xf32, #tpu.memory_space<vmem>>, vector<1x8xf32>
    %20 = vector.broadcast %19 : vector<1x8xf32> to vector<64x8xf32>
    %21 = arith.addf %18, %20 : vector<64x8xf32>
    %cst_14 = arith.constant 0.000000e+00 : f32
    %22 = vector.broadcast %cst_14 : f32 to vector<64x8xf32>
    %23 = arith.maximumf %21, %22 : vector<64x8xf32>
    %24 = arith.truncf %23 : vector<64x8xf32> to vector<64x8xbf16>
    %c0_15 = arith.constant 0 : index
    %c0_16 = arith.constant 0 : index
    %25 = vector.load %arg8[%c0_15, %c0_16] : memref<64x8xbf16, #tpu.memory_space<vmem>>, vector<64x8xbf16>
    tpu.vector_store %arg8[%c0_15, %c0_16], %24 {strides = array<i32>} : memref<64x8xbf16, #tpu.memory_space<vmem>>, vector<64x8xbf16>,
    return
  }
  func.func @transform_0(%arg0: i32) -> (i32, i32) {
    %c0_i32 = arith.constant 0 : i32
    %c0_i32_0 = arith.constant 0 : i32
    return %arg0, %c0_i32 : i32, i32
  }
  func.func @transform_1(%arg0: i32) -> (i32, i32) {
    %c0_i32 = arith.constant 0 : i32
    %c0_i32_0 = arith.constant 0 : i32
    %c0_i32_1 = arith.constant 0 : i32
    return %c0_i32, %c0_i32_0 : i32, i32
  }
  func.func @transform_2(%arg0: i32) -> (i32, i32) {
    %c0_i32 = arith.constant 0 : i32
    %c0_i32_0 = arith.constant 0 : i32
    %c0_i32_1 = arith.constant 0 : i32
    return %c0_i32, %c0_i32_0 : i32, i32
  }
  func.func @transform_3(%arg0: i32) -> (i32, i32) {
    %c0_i32 = arith.constant 0 : i32
    %c0_i32_0 = arith.constant 0 : i32
    %c0_i32_1 = arith.constant 0 : i32
    return %c0_i32, %c0_i32_0 : i32, i32
  }
  func.func @transform_4(%arg0: i32) -> (i32, i32) {
    %c0_i32 = arith.constant 0 : i32
    %c0_i32_0 = arith.constant 0 : i32
    %c0_i32_1 = arith.constant 0 : i32
    return %c0_i32, %c0_i32_0 : i32, i32
  }
  func.func @transform_5(%arg0: i32) -> (i32, i32) {
    %c0_i32 = arith.constant 0 : i32
    %c0_i32_0 = arith.constant 0 : i32
    %c0_i32_1 = arith.constant 0 : i32
    return %c0_i32, %c0_i32_0 : i32, i32
  }
  func.func @transform_6(%arg0: i32) -> (i32, i32) {
    %c0_i32 = arith.constant 0 : i32
    %c0_i32_0 = arith.constant 0 : i32
    return %arg0, %c0_i32 : i32, i32
  }
  func.func @transform_7(%arg0: i32) -> (i32, i32) {
    %c0_i32 = arith.constant 0 : i32
    %c0_i32_0 = arith.constant 0 : i32
    return %arg0, %c0_i32 : i32, i32
  }
}

module attributes {stable_mosaic.version = 11 : i64} {
  func.func @_se_gate_kernel(%arg0: memref<2x3x32xf32, #tpu.memory_space<vmem>>, %arg1: memref<32x32xf32, #tpu.memory_space<vmem>>, %arg2: memref<32x96xf32, #tpu.memory_space<vmem>>, %arg3: memref<2x3x32xf32, #tpu.memory_space<vmem>>) attributes {dimension_semantics = [], scalar_prefetch = 0 : i64, scratch_operands = 0 : i64, tpu.core_type = #tpu.core_type<tc>} {
    %c0 = arith.constant 0 : index
    %c0_0 = arith.constant 0 : index
    %c0_1 = arith.constant 0 : index
    %0 = vector.load %arg0[%c0, %c0_0, %c0_1] : memref<2x3x32xf32, #tpu.memory_space<vmem>>, vector<2x3x32xf32>
    %1 = vector.extract_strided_slice %0 {offsets = [0, 0, 0], sizes = [2, 1, 32], strides = [1, 1, 1]} : vector<2x3x32xf32> to vector<2x1x32xf32>
    %2 = vector.shape_cast %1 : vector<2x1x32xf32> to vector<2x32xf32>
    %3 = vector.extract_strided_slice %0 {offsets = [0, 1, 0], sizes = [2, 1, 32], strides = [1, 1, 1]} : vector<2x3x32xf32> to vector<2x1x32xf32>
    %4 = vector.shape_cast %3 : vector<2x1x32xf32> to vector<2x32xf32>
    %5 = arith.addf %2, %4 : vector<2x32xf32>
    %6 = vector.extract_strided_slice %0 {offsets = [0, 2, 0], sizes = [2, 1, 32], strides = [1, 1, 1]} : vector<2x3x32xf32> to vector<2x1x32xf32>
    %7 = vector.shape_cast %6 : vector<2x1x32xf32> to vector<2x32xf32>
    %8 = arith.addf %5, %7 : vector<2x32xf32>
    %c0_2 = arith.constant 0 : index
    %c0_3 = arith.constant 0 : index
    %9 = vector.load %arg1[%c0_2, %c0_3] : memref<32x32xf32, #tpu.memory_space<vmem>>, vector<32x32xf32>
    %cst = arith.constant dense<0.000000e+00> : vector<2x32xf32>
    %10 = tpu.matmul %8, %9, %cst {dimension_numbers = #tpu.dot_dimension_numbers<[1], [0], [0], [1], [0, 0, 1, 1], [], []>} : vector<2x32xf32>, vector<32x32xf32>, vector<2x32xf32> -> vector<2x32xf32>
    %cst_4 = arith.constant 0.000000e+00 : f32
    %11 = vector.broadcast %cst_4 : f32 to vector<2x32xf32>
    %12 = arith.maximumf %10, %11 : vector<2x32xf32>
    %c0_5 = arith.constant 0 : index
    %c0_6 = arith.constant 0 : index
    %13 = vector.load %arg2[%c0_5, %c0_6] : memref<32x96xf32, #tpu.memory_space<vmem>>, vector<32x96xf32>
    %cst_7 = arith.constant dense<0.000000e+00> : vector<2x96xf32>
    %14 = tpu.matmul %12, %13, %cst_7 {dimension_numbers = #tpu.dot_dimension_numbers<[1], [0], [0], [1], [0, 0, 1, 1], [], []>} : vector<2x32xf32>, vector<32x96xf32>, vector<2x96xf32> -> vector<2x96xf32>
    %15 = vector.extract_strided_slice %14 {offsets = [0, 0], sizes = [2, 32], strides = [1, 1]} : vector<2x96xf32> to vector<2x32xf32>
    %16 = vector.extract_strided_slice %14 {offsets = [0, 32], sizes = [2, 32], strides = [1, 1]} : vector<2x96xf32> to vector<2x32xf32>
    %17 = vector.extract_strided_slice %14 {offsets = [0, 64], sizes = [2, 32], strides = [1, 1]} : vector<2x96xf32> to vector<2x32xf32>
    %18 = arith.maximumf %15, %16 : vector<2x32xf32>
    %19 = arith.maximumf %18, %17 : vector<2x32xf32>
    %20 = arith.subf %15, %19 : vector<2x32xf32>
    %21 = math.exp %20 : vector<2x32xf32>
    %22 = arith.subf %16, %19 : vector<2x32xf32>
    %23 = math.exp %22 : vector<2x32xf32>
    %24 = arith.subf %17, %19 : vector<2x32xf32>
    %25 = math.exp %24 : vector<2x32xf32>
    %26 = arith.addf %21, %23 : vector<2x32xf32>
    %27 = arith.addf %26, %25 : vector<2x32xf32>
    %cst_8 = arith.constant 1.000000e+00 : f32
    %28 = vector.broadcast %cst_8 : f32 to vector<2x32xf32>
    %29 = arith.divf %28, %27 : vector<2x32xf32>
    %30 = arith.mulf %21, %29 : vector<2x32xf32>
    %c0_9 = arith.constant 0 : index
    %c0_10 = arith.constant 0 : index
    %c0_11 = arith.constant 0 : index
    %31 = vector.load %arg3[%c0_9, %c0_10, %c0_11] : memref<2x3x32xf32, #tpu.memory_space<vmem>>, vector<2x1x32xf32>
    %32 = vector.shape_cast %31 : vector<2x1x32xf32> to vector<2x32xf32>
    %33 = vector.shape_cast %30 : vector<2x32xf32> to vector<2x1x32xf32>
    tpu.vector_store %arg3[%c0_9, %c0_10, %c0_11], %33 {strides = array<i32>} : memref<2x3x32xf32, #tpu.memory_space<vmem>>, vector<2x1x32xf32>,
    %34 = arith.mulf %23, %29 : vector<2x32xf32>
    %c0_12 = arith.constant 0 : index
    %c1 = arith.constant 1 : index
    %c0_13 = arith.constant 0 : index
    %35 = vector.load %arg3[%c0_12, %c1, %c0_13] : memref<2x3x32xf32, #tpu.memory_space<vmem>>, vector<2x1x32xf32>
    %36 = vector.shape_cast %35 : vector<2x1x32xf32> to vector<2x32xf32>
    %37 = vector.shape_cast %34 : vector<2x32xf32> to vector<2x1x32xf32>
    tpu.vector_store %arg3[%c0_12, %c1, %c0_13], %37 {strides = array<i32>} : memref<2x3x32xf32, #tpu.memory_space<vmem>>, vector<2x1x32xf32>,
    %38 = arith.mulf %25, %29 : vector<2x32xf32>
    %c0_14 = arith.constant 0 : index
    %c2 = arith.constant 2 : index
    %c0_15 = arith.constant 0 : index
    %39 = vector.load %arg3[%c0_14, %c2, %c0_15] : memref<2x3x32xf32, #tpu.memory_space<vmem>>, vector<2x1x32xf32>
    %40 = vector.shape_cast %39 : vector<2x1x32xf32> to vector<2x32xf32>
    %41 = vector.shape_cast %38 : vector<2x32xf32> to vector<2x1x32xf32>
    tpu.vector_store %arg3[%c0_14, %c2, %c0_15], %41 {strides = array<i32>} : memref<2x3x32xf32, #tpu.memory_space<vmem>>, vector<2x1x32xf32>,
    return
  }
}

module attributes {stable_mosaic.version = 11 : i64} {
  func.func @_scale_add_kernel(%arg0: i32, %arg1: i32, %arg2: memref<1x6x8x32xbf16, #tpu.memory_space<vmem>>, %arg3: memref<1x6x8x32xbf16, #tpu.memory_space<vmem>>, %arg4: memref<1x3x32xf32, #tpu.memory_space<vmem>>, %arg5: memref<1x6x8x32xf32, #tpu.memory_space<vmem>>) attributes {dimension_semantics = [#tpu.dimension_semantics<parallel>, #tpu.dimension_semantics<parallel>], iteration_bounds = array<i64: 2, 2>, scalar_prefetch = 0 : i64, scratch_operands = 0 : i64, tpu.core_type = #tpu.core_type<tc>, window_params = [{transform_indices = @transform_0, window_bounds = array<i64: 1, 6, 8, 32>}, {transform_indices = @transform_1, window_bounds = array<i64: 1, 6, 8, 32>}, {transform_indices = @transform_2, window_bounds = array<i64: 1, 3, 32>}, {transform_indices = @transform_3, window_bounds = array<i64: 1, 6, 8, 32>}]} {
    %c0 = arith.constant 0 : index
    %c0_0 = arith.constant 0 : index
    %c0_1 = arith.constant 0 : index
    %c0_2 = arith.constant 0 : index
    %0 = vector.load %arg2[%c0, %c0_0, %c0_1, %c0_2] : memref<1x6x8x32xbf16, #tpu.memory_space<vmem>>, vector<1x6x8x32xbf16>
    %1 = arith.extf %0 : vector<1x6x8x32xbf16> to vector<1x6x8x32xf32>
    %c0_3 = arith.constant 0 : index
    %c0_4 = arith.constant 0 : index
    %c0_5 = arith.constant 0 : index
    %c0_6 = arith.constant 0 : index
    %2 = vector.load %arg3[%c0_3, %c0_4, %c0_5, %c0_6] : memref<1x6x8x32xbf16, #tpu.memory_space<vmem>>, vector<1x6x8x32xbf16>
    %3 = arith.extf %2 : vector<1x6x8x32xbf16> to vector<1x6x8x32xf32>
    %c0_7 = arith.constant 0 : index
    %c0_8 = arith.constant 0 : index
    %c0_9 = arith.constant 0 : index
    %4 = vector.load %arg4[%c0_7, %c0_8, %c0_9] : memref<1x3x32xf32, #tpu.memory_space<vmem>>, vector<1x3x32xf32>
    %c6_i32 = arith.constant 6 : i32
    %5 = arith.muli %arg1, %c6_i32 : i32
    %6 = tpu.iota {dimensions = array<i32: 0>} : vector<6x1xi32>
    %7 = vector.broadcast %5 : i32 to vector<6x1xi32>
    %8 = arith.addi %7, %6 : vector<6x1xi32>
    %c4_i32 = arith.constant 4 : i32
    %9 = vector.broadcast %c4_i32 : i32 to vector<6x1xi32>
    %10 = arith.cmpi slt, %8, %9 : vector<6x1xi32>
    %11 = vector.extract_strided_slice %4 {offsets = [0, 0, 0], sizes = [1, 1, 32], strides = [1, 1, 1]} : vector<1x3x32xf32> to vector<1x1x32xf32>
    %12 = vector.shape_cast %11 : vector<1x1x32xf32> to vector<1x32xf32>
    %c8_i32 = arith.constant 8 : i32
    %13 = vector.broadcast %c8_i32 : i32 to vector<6x1xi32>
    %14 = arith.cmpi slt, %8, %13 : vector<6x1xi32>
    %15 = vector.extract_strided_slice %4 {offsets = [0, 1, 0], sizes = [1, 1, 32], strides = [1, 1, 1]} : vector<1x3x32xf32> to vector<1x1x32xf32>
    %16 = vector.shape_cast %15 : vector<1x1x32xf32> to vector<1x32xf32>
    %17 = vector.extract_strided_slice %4 {offsets = [0, 2, 0], sizes = [1, 1, 32], strides = [1, 1, 1]} : vector<1x3x32xf32> to vector<1x1x32xf32>
    %18 = vector.shape_cast %17 : vector<1x1x32xf32> to vector<1x32xf32>
    %19 = vector.shape_cast %14 : vector<6x1xi1> to vector<6x1xi1>
    %20 = vector.broadcast %19 : vector<6x1xi1> to vector<6x32xi1>
    %21 = vector.shape_cast %16 : vector<1x32xf32> to vector<1x32xf32>
    %22 = vector.broadcast %21 : vector<1x32xf32> to vector<6x32xf32>
    %23 = vector.shape_cast %18 : vector<1x32xf32> to vector<1x32xf32>
    %24 = vector.broadcast %23 : vector<1x32xf32> to vector<6x32xf32>
    %25 = arith.select %20, %22, %24 : vector<6x32xi1>, vector<6x32xf32>
    %26 = vector.shape_cast %10 : vector<6x1xi1> to vector<6x1xi1>
    %27 = vector.broadcast %26 : vector<6x1xi1> to vector<6x32xi1>
    %28 = vector.shape_cast %12 : vector<1x32xf32> to vector<1x32xf32>
    %29 = vector.broadcast %28 : vector<1x32xf32> to vector<6x32xf32>
    %30 = arith.select %27, %29, %25 : vector<6x32xi1>, vector<6x32xf32>
    %31 = vector.shape_cast %30 : vector<6x32xf32> to vector<1x6x1x32xf32>
    %32 = vector.broadcast %31 : vector<1x6x1x32xf32> to vector<1x6x8x32xf32>
    %33 = arith.mulf %1, %32 : vector<1x6x8x32xf32>
    %34 = arith.addf %33, %3 : vector<1x6x8x32xf32>
    %c0_10 = arith.constant 0 : index
    %c0_11 = arith.constant 0 : index
    %c0_12 = arith.constant 0 : index
    %c0_13 = arith.constant 0 : index
    %35 = vector.load %arg5[%c0_10, %c0_11, %c0_12, %c0_13] : memref<1x6x8x32xf32, #tpu.memory_space<vmem>>, vector<1x6x8x32xf32>
    tpu.vector_store %arg5[%c0_10, %c0_11, %c0_12, %c0_13], %34 {strides = array<i32>} : memref<1x6x8x32xf32, #tpu.memory_space<vmem>>, vector<1x6x8x32xf32>,
    return
  }
  func.func @transform_0(%arg0: i32, %arg1: i32) -> (i32, i32, i32, i32) {
    %c0_i32 = arith.constant 0 : i32
    %c0_i32_0 = arith.constant 0 : i32
    %c0_i32_1 = arith.constant 0 : i32
    return %arg0, %arg1, %c0_i32, %c0_i32_0 : i32, i32, i32, i32
  }
  func.func @transform_1(%arg0: i32, %arg1: i32) -> (i32, i32, i32, i32) {
    %c0_i32 = arith.constant 0 : i32
    %c0_i32_0 = arith.constant 0 : i32
    %c0_i32_1 = arith.constant 0 : i32
    return %arg0, %arg1, %c0_i32, %c0_i32_0 : i32, i32, i32, i32
  }
  func.func @transform_2(%arg0: i32, %arg1: i32) -> (i32, i32, i32) {
    %c0_i32 = arith.constant 0 : i32
    %c0_i32_0 = arith.constant 0 : i32
    %c0_i32_1 = arith.constant 0 : i32
    return %arg0, %c0_i32, %c0_i32_0 : i32, i32, i32
  }
  func.func @transform_3(%arg0: i32, %arg1: i32) -> (i32, i32, i32, i32) {
    %c0_i32 = arith.constant 0 : i32
    %c0_i32_0 = arith.constant 0 : i32
    %c0_i32_1 = arith.constant 0 : i32
    return %arg0, %arg1, %c0_i32, %c0_i32_0 : i32, i32, i32, i32
  }
}

</mosaic_0001>

<bundles_post_ra>
// kernel: se_preact_bottleneck_forward.4
= control target key start
LH: loop header
LB: loop body
LE: loop exit
PB: predicated region body
PF: predicated region fallthrough
CT: control target
= control target key end

     0   :  { %13 = vsyncpa [#allocation3], 0  ;;  %s1084_s0 = inlined_call_operand.hbm [shape: f32[192,16], index: 0, kind: input, shape index: {}]   ;;  %s1085_s1 = inlined_call_operand.vmem [shape: bf16[16,40], index: 1, kind: input, shape index: {}]   ;;  %s1086_s2 = inlined_call_operand.vmem [shape: f32[1,16], index: 2, kind: input, shape index: {}]   ;;  %s1087_s3 = inlined_call_operand.vmem [shape: f32[1,16], index: 3, kind: input, shape index: {}]   ;;  %s1088_s4 = inlined_call_operand.vmem [shape: f32[1,8], index: 4, kind: input, shape index: {}]   ;;  %s1089_s5 = inlined_call_operand.vmem [shape: f32[1,8], index: 5, kind: input, shape index: {}]   ;;  %s1090_s6 = inlined_call_operand.vmem [shape: bf16[192,32], index: 6, kind: output, shape index: {0}]   ;;  %s1091_s7 = inlined_call_operand.vmem [shape: bf16[192,8], index: 7, kind: output, shape index: {1}]  }
   0x1   :  { %15 = vsyncpa [#allocation3 + $0x1], 0  ;;  %s922_s24 = smov 0   ;;  %s924_s25 = smov 0  }
   0x2   :  { %s926_s26 = smov 0   ;;  %s928_s27 = smov 0  }
   0x3 LB: > { %s693_s28 = sadd.s32 4294967295, %s875_s27   ;;  %s942_s29 = sadd.s32 1, %s875_s27   ;;  %s875_s27 = sphi %s928_s27, %s1098_s27   ;;  %s871_s26 = sphi %s926_s26, %s1097_s26   ;;  %s867_s25 = sphi %s924_s25, %s1096_s25   ;;  %s863_s24 = sphi %s922_s24, %s1095_s24  }
   0x4   : > { %s25_s30 = ssub.s32 %s875_s27, %s942_s29  ;;  %s28_s8 = sadd.s32 1, %s871_s26 }
   0x5   : > { %p26_p0 = scmp.eq.s32.totalorder %s25_s30, 0  ;;  %p35_p1 = scmp.ne.s32.totalorder %s871_s26, %s867_s25 }
   0x6   : > { %p36_p2 = scmp.eq.s32.totalorder %s875_s27, 0  ;;  %p41_p3 = scmp.ne.s32.totalorder %s867_s25, %s863_s24 }
   0x7   : > { %s952_s9 = scalar_select %p26_p0, %s871_s26, %s28_s8  }
   0x8   : > { %p37_p4 = por %p36_p2, %p35_p1  ;;  %p42_p5 = scmp.eq.s32.totalorder %s693_s28, 0 }
   0x9   : > { %p773_p6 = scmp.lt.s32.totalorder %s875_s27, 3  ;;  %s237_s11 = sand.u32 1, %s871_s26  }
   0xa   : > { %p957_p7 = por %p42_p5, %p41_p3  ;;  %s697_s12 = sshll.u32 %s237_s11, 6 }
   0xb   : > { %s733_s13 = sshll.u32 %s875_s27, 10  ;;  %s241_s17 = scalar_lea.vmem [#allocation2], %s697_s12 }
   0xc   : > { %s966_s16 = scalar_lea.hbm %s1084_s0, %s733_s13  ;;  %s248_s18 = sshll.u32 %s241_s17, 4  ;;  %s968_s18 = int_to_ptr.vmem [resolvable:$true] %s248_s18 }
   0xd   : > { %p970_p8 = pnand %p773_p6, %p37_p4  ;;  %s975_s20 = scalar_lea.sflag [#allocation3], %s237_s11 }
   0xe   : > { %s811_s21 = scalar_lea.hbm %s966_s16, 1024  ;;  %s816_s24 = scalar_lea.hbm %s1084_s0, 3072 }
   0xf   : > { %p812_p10 = scmp.ne.s32.totalorder %s966_s16, %s811_s21  ;;  %p813_p11 = pneg %p970_p8 }
  0x10   : > { %p817_p0 = scmp.lt.u32.totalorder %s966_s16, %s1084_s0  ;;  %p818_p1 = scmp.lt.u32.totalorder %s816_s24, %s811_s21 }
  0x11   : > { %p814_p12 = pnand %p813_p11, %p812_p10  ;;  %p820_p3 = scmp.lt.u32.totalorder %s811_s21, %s966_s16 }
  0x12   : > { %p819_p2 = por %p818_p1, %p817_p0 }
  0x13   : > { %p815_p13 = pneg %p814_p12 }
  0x14   : > { %p821_p4 = por %p820_p3, %p819_p2 }
  0x16   : > { %p822_p5 = pnand %p821_p4, %p815_p13 }
  0x18   : > { %825 = shalt.err (!%p822_p5)
}
  0x19   : > { %s826_s11 = scalar_lea.vmem %s968_s18, 1024  ;;  %s877_s12 = smov [#allocation2]  }
  0x1a   : > { %p827_p6 = scmp.ne.s32.totalorder %s968_s18, %s826_s11  ;;  %s831_s13 = sshll.u32 %s877_s12, 4  ;;  %s832_s13 = int_to_ptr.vmem [resolvable:$false] %s831_s13 }
  0x1b   : > { %s833_s14 = scalar_lea.vmem %s832_s13, 2048  ;;  %p834_p9 = scmp.lt.s32.totalorder %s968_s18, %s832_s13 }
  0x1c   : > { %p829_p10 = pnand %p827_p6, %p813_p11  ;;  %p835_p0 = scmp.lt.s32.totalorder %s833_s14, %s826_s11 }
  0x1e   : > { %p830_p12 = pneg %p829_p10  ;;  %p836_p1 = por %p835_p0, %p834_p9 }
  0x20   : > { %p837_p2 = pnand %p836_p1, %p830_p12 }
  0x22   : > { %840 = shalt.err (!%p837_p2)
}
  0x23   : > { %s878_s15 = smov 128   ;;  %s879_s17 = smov 8  }
  0x24   : > { %772 = dma.hbm_to_vmem [thread:$0]  (!%p970_p8), %s966_s16, 1024, %s968_s18, %s975_s20, %s878_s15, %s878_s15, %s879_s17  }
  0x25   : > { %p256_p11 = scmp.lt.s32.totalorder %s875_s27, 4  ;;  %p1094_p13 = scmp.ge.s32.totalorder %s875_s27, 1 }
  0x27   : > { %p257_p3 = pnand %p1094_p13, %p256_p11 }
  0x28   : > { %s262_s21 = sand.u32 (!%p257_p3), 1, %s867_s25  }
  0x29   : > { %260 = sbr.rel (%p257_p3) target bundleno = 416 (0x1a0), region = 44  ;;  %s701_s22 = sshll.u32 (!%p257_p3), %s262_s21, 6 }
  0x2a   : > { %s263_s23 = scalar_lea.sflag (!%p257_p3), [#allocation3], %s262_s21  ;;  %s266_s24 = scalar_lea.vmem (!%p257_p3), [#allocation2], %s701_s22 }
  0x30   : > { %858 = dma.done.wait (%p957_p7), %s263_s23, 1024  }
  0x31   : > { %860 = vsyncadd (%p957_p7), %s263_s23, 4294966272  ;;  %v810_v0 = vld [vmem:[%s1085_s1] sm:$0xff]   ;;  %v317_v2 = vld [vmem:[%s266_s24 + $0x8] sm:$0xff]  ;;  %vm374_vm0 = vcmask 130048   ;;  %s880_s12 = smov 32   ;;  %s702_s15 = sshll.u32 %s693_s28, 3 }
  0x32   : > { %v316_v1 = vld [vmem:[%s266_s24] sm:$0xff]  ;;  %755 = vmatprep.subr.bf16.mxu0 %v810_v0  ;;  %765 = vmatprep.subr.bf16.mxu1 %v810_v0  ;;  %v321_v8 = vld [vmem:[%s266_s24 + $0x28] sm:$0xff]  ;;  %v318_v11 = vld [vmem:[%s266_s24 + $0x10] sm:$0xff]  ;;  %p304_p7 = scmp.lt.s32.totalorder %s702_s15, 23  ;;  %vm484_vm1 = vcmask 257024   ;;  %s881_s27 = smov 96  }
  0x33   : > { %v706_v3 = vld [vmem:[%s1086_s2] ss:$0 sm:$0xff]  ;;  %756 = vmatpush3.bf16.msra.mxu0 %v810_v0  ;;  %766 = vmatpush3.bf16.msra.mxu1 %v810_v0  ;;  %v319_v12 = vld [vmem:[%s266_s24 + $0x18] sm:$0xff]  ;;  %v322_v13 = vld [vmem:[%s266_s24 + $0x30] sm:$0xff]  ;;  %vm583_vm2 = vcmask 60416  }
  0x34   : > { %v331_v4 = vmul.f32 %v706_v3, %v316_v1  ;;  %v332_v5 = vmul.f32 %v706_v3, %v317_v2  ;;  %v707_v6 = vld [vmem:[%s1087_s3] ss:$0 sm:$0xff]  ;;  %v336_v10 = vmul.f32 %v706_v3, %v321_v8  ;;  %v333_v16 = vmul.f32 %v706_v3, %v318_v11  ;;  %v323_v18 = vld [vmem:[%s266_s24 + $0x38] sm:$0xff]  ;;  %s1100_s15 = smov (!%p304_p7, %s702_s15), 23 }
  0x35   : > { %v320_v7 = vld [vmem:[%s266_s24 + $0x20] sm:$0xff]  ;;  %v334_v17 = vmul.f32 %v706_v3, %v319_v12  ;;  %v337_v22 = vmul.f32 %v706_v3, %v322_v13  ;;  %v338_v23 = vmul.f32 %v706_v3, %v323_v18  ;;  %s703_s17 = sshll.u32 %s1100_s15, 2 }
  0x36   : > { %v335_v9 = vmul.f32 %v706_v3, %v320_v7  ;;  %v346_v14 = vadd.f32 %v707_v6, %v331_v4  ;;  %v347_v15 = vadd.f32 %v707_v6, %v332_v5  ;;  %v721_v19 = vld [vmem:[%s1088_s4] ss:$0 sm:$0xff]  ;;  %v351_v21 = vadd.f32 %v707_v6, %v336_v10  ;;  %s1040_s23 = scalar_lea.vmem %s1090_s6, %s703_s17  ;;  %s313_s30 = scalar_lea.vmem %s1091_s7, %s703_s17 }
  0x37   : > { %499 = vrot.lane.b32.xlu0 %v721_v19, %s880_s12  ;;  %v348_v26 = vadd.f32 %v707_v6, %v333_v16  ;;  %v349_v27 = vadd.f32 %v707_v6, %v334_v17  ;;  %v722_v28 = vld [vmem:[%s1089_s5] ss:$0 sm:$0xff]  ;;  %v352_v31 = vadd.f32 %v707_v6, %v337_v22  ;;  %v353_v32 = vadd.f32 %v707_v6, %v338_v23 }
  0x38   : > { %v350_v20 = vadd.f32 %v707_v6, %v335_v9  ;;  %v354_v24 = vmax.f32 %v346_v14, 0.0  ;;  %v355_v25 = vmax.f32 %v347_v15, 0.0  ;;  %v359_v30 = vmax.f32 %v351_v21, 0.0 }
  0x39   : > { %v356_v34 = vmax.f32 %v348_v26, 0.0  ;;  %v357_v35 = vmax.f32 %v349_v27, 0.0  ;;  %v360_v37 = vmax.f32 %v352_v31, 0.0  ;;  %v361_v38 = vmax.f32 %v353_v32, 0.0 }
  0x3a   : > { %v358_v29 = vmax.f32 %v350_v20, 0.0  ;;  %v362_v33 = vpack.c.bf16 %v355_v25, %v354_v24 }
  0x3b   : > { %516 = vrot.lane.b32.xlu0 %v722_v28, %s880_s12  ;;  %v363_v39 = vpack.c.bf16 %v357_v35, %v356_v34  ;;  %v365_v40 = vpack.c.bf16 %v361_v38, %v360_v37 }
  0x3c   : > { %v364_v36 = vpack.c.bf16 %v359_v30, %v358_v29  ;;  %757 = vmatprep.mubr.msk.bf16.mxu0 %vm374_vm0, %v362_v33 }
  0x3d   : > { %758 = vmatmul.mubr.msk.bf16.vlgmr.msra.gmra.mrb[0].mxu0 %vm374_vm0, %v363_v39 }
  0x3e   : > { %761 = vmatprep.mubr.msk.bf16.mxu1 %vm374_vm0, %v364_v36 }
  0x3f   : > { %762 = vmatmul.mubr.msk.bf16.vlgmr.msra.gmra.mrb[0].mxu1 %vm374_vm0, %v365_v40 }
  0xa9   : > { %v500_v41 = vpop.permute.xlu0 %499 }
  0xad   : > { %v517_v43 = vpop.permute.xlu0 %516 }
 0x110   : > { %v759_v42 = vpop.f32.mrb[0].mxu0 }
 0x111   : > { %v736_v44 = vpack.c.bf16 %v759_v42, %v759_v42  ;;  %v504_v45 = vmul.f32 %v759_v42, %v500_v41  ;;  %v421_v47 = vpop.f32.mrb[1].mxu0 }
 0x112   : > { %v763_v46 = vpop.f32.mrb[0].mxu1  ;;  %v734_v49 = vpack.c.bf16 %v421_v47, %v421_v47  ;;  %v502_v50 = vmul.f32 %v500_v41, %v421_v47  ;;  %v760_v52 = vpop.f32.mrb[2].mxu0 }
 0x113   : > { %v740_v48 = vpack.c.bf16 %v763_v46, %v763_v46  ;;  %v437_v51 = vpop.f32.mrb[1].mxu1  ;;  %487 = vst.msk [vmem:[%s1040_s23 + $0x8] sm:$0xf] %vm484_vm1, %v736_v44  ;;  %v737_v55 = vpack.c.bf16 %v760_v52, %v760_v52  ;;  %v505_v56 = vmul.f32 %v760_v52, %v500_v41  ;;  %v424_v58 = vpop.f32.mrb[3].mxu0  ;;  %v508_v62 = vmul.f32 %v763_v46, %v500_v41 }
 0x114   : > { %v738_v53 = vpack.c.bf16 %v437_v51, %v437_v51  ;;  %v506_v54 = vmul.f32 %v500_v41, %v437_v51  ;;  %v764_v57 = vpop.f32.mrb[2].mxu1  ;;  %485 = vst.msk [vmem:[%s1040_s23] sm:$0xf] %vm484_vm1, %v734_v49  ;;  %v735_v60 = vpack.c.bf16 %v424_v58, %v424_v58  ;;  %v521_v0 = vadd.f32 %v517_v43, %v504_v45 }
 0x115   : > { %491 = vst.msk [vmem:[%s1040_s23 + $0x18] sm:$0xf] %vm484_vm1, %v740_v48  ;;  %v741_v59 = vpack.c.bf16 %v764_v57, %v764_v57  ;;  %v440_v61 = vpop.f32.mrb[3].mxu1  ;;  %488 = vst.msk [vmem:[%s1040_s23 + $0xc] sm:$0xf] %vm484_vm1, %v737_v55  ;;  %v522_v1 = vadd.f32 %v517_v43, %v505_v56  ;;  %v503_v2 = vmul.f32 %v500_v41, %v424_v58 }
 0x116   : > { %489 = vst.msk [vmem:[%s1040_s23 + $0x10] sm:$0xf] %vm484_vm1, %v738_v53  ;;  %v739_v63 = vpack.c.bf16 %v440_v61, %v440_v61  ;;  %486 = vst.msk [vmem:[%s1040_s23 + $0x4] sm:$0xf] %vm484_vm1, %v735_v60  ;;  %v519_v3 = vadd.f32 %v517_v43, %v502_v50  ;;  %v523_v4 = vadd.f32 %v517_v43, %v506_v54  ;;  %v529_v5 = vmax.f32 %v521_v0, 0.0 }
 0x117   : > { %492 = vst.msk [vmem:[%s1040_s23 + $0x1c] sm:$0xf] %vm484_vm1, %v741_v59  ;;  %v525_v9 = vadd.f32 %v517_v43, %v508_v62  ;;  %v530_v10 = vmax.f32 %v522_v1, 0.0  ;;  %v520_v11 = vadd.f32 %v517_v43, %v503_v2  ;;  %v507_v12 = vmul.f32 %v500_v41, %v440_v61 }
 0x118   : > { %490 = vst.msk [vmem:[%s1040_s23 + $0x14] sm:$0xf] %vm484_vm1, %v739_v63  ;;  %v527_v6 = vmax.f32 %v519_v3, 0.0  ;;  %v744_v7 = vpack.c.bf16 %v529_v5, %v529_v5  ;;  %v531_v8 = vmax.f32 %v523_v4, 0.0  ;;  %v509_v16 = vmul.f32 %v764_v57, %v500_v41 }
 0x119   : > { %v533_v15 = vmax.f32 %v525_v9, 0.0  ;;  %v528_v17 = vmax.f32 %v520_v11, 0.0  ;;  %v524_v18 = vadd.f32 %v517_v43, %v507_v12  ;;  %v745_v19 = vpack.c.bf16 %v530_v10, %v530_v10 }
 0x11a   : > { %v742_v13 = vpack.c.bf16 %v527_v6, %v527_v6  ;;  %563 = vrot.lane.b32.xlu0 %v744_v7, %s881_s27  ;;  %v746_v14 = vpack.c.bf16 %v531_v8, %v531_v8  ;;  %v526_v21 = vadd.f32 %v517_v43, %v509_v16 }
 0x11b   : > { %v748_v20 = vpack.c.bf16 %v533_v15, %v533_v15  ;;  %v743_v22 = vpack.c.bf16 %v528_v17, %v528_v17  ;;  %v532_v23 = vmax.f32 %v524_v18, 0.0 }
 0x11c   : > { %559 = vrot.lane.b32.xlu1 %v742_v13, %s881_s27  ;;  %v534_v24 = vmax.f32 %v526_v21, 0.0 }
 0x11d   : > { %v747_v25 = vpack.c.bf16 %v532_v23, %v532_v23 }
 0x11e   : > { %567 = vrot.lane.b32.xlu0 %v746_v14, %s881_s27  ;;  %v749_v26 = vpack.c.bf16 %v534_v24, %v534_v24 }
 0x120   : > { %565 = vrot.lane.b32.xlu1 %v745_v19, %s881_s27 }
 0x122   : > { %571 = vrot.lane.b32.xlu0 %v748_v20, %s881_s27 }
 0x124   : > { %561 = vrot.lane.b32.xlu1 %v743_v22, %s881_s27 }
 0x128   : > { %569 = vrot.lane.b32.xlu1 %v747_v25, %s881_s27 }
 0x12c   : > { %573 = vrot.lane.b32.xlu1 %v749_v26, %s881_s27 }
 0x18c   : > { %v564_v27 = vpop.permute.xlu0 %563 }
 0x18d   : > { %586 = vst.msk [vmem:[%s313_s30 + $0x8] sm:$0xf] %vm583_vm2, %v564_v27 }
 0x18e   : > { %v560_v28 = vpop.permute.xlu1 %559 }
 0x18f   : > { %584 = vst.msk [vmem:[%s313_s30] sm:$0xf] %vm583_vm2, %v560_v28 }
 0x190   : > { %v568_v29 = vpop.permute.xlu0 %567 }
 0x191   : > { %588 = vst.msk [vmem:[%s313_s30 + $0x10] sm:$0xf] %vm583_vm2, %v568_v29 }
 0x192   : > { %v566_v30 = vpop.permute.xlu1 %565 }
 0x193   : > { %587 = vst.msk [vmem:[%s313_s30 + $0xc] sm:$0xf] %vm583_vm2, %v566_v30 }
 0x194   : > { %v572_v31 = vpop.permute.xlu0 %571 }
 0x195   : > { %590 = vst.msk [vmem:[%s313_s30 + $0x18] sm:$0xf] %vm583_vm2, %v572_v31 }
 0x196   : > { %v562_v32 = vpop.permute.xlu1 %561 }
 0x197   : > { %585 = vst.msk [vmem:[%s313_s30 + $0x4] sm:$0xf] %vm583_vm2, %v562_v32 }
 0x19a   : > { %v570_v33 = vpop.permute.xlu1 %569 }
 0x19b   : > { %589 = vst.msk [vmem:[%s313_s30 + $0x14] sm:$0xf] %vm583_vm2, %v570_v33 }
 0x19e   : > { %v574_v34 = vpop.permute.xlu1 %573 }
 0x19f   : > { %591 = vst.msk [vmem:[%s313_s30 + $0x1c] sm:$0xf] %vm583_vm2, %v574_v34 }
 0x1a0 PF: > { %p18_p8 = scmp.ge.s32.totalorder %s942_s29, 5   ;;  %s1095_s24 = smov %s867_s25 }
 0x1a1   : > { %s1096_s25 = smov %s871_s26  ;;  %s1097_s26 = smov %s952_s9 }
 0x1a2   : > { %s1098_s27 = smov %s942_s29  ;;  %20 = sbr.rel (!%p18_p8) target bundleno = 3 (0x3), region = 96 }
 0x1a9   :  { %631 = vsyncpa [#allocation3], 1 }
 0x1aa   :  { %633 = vsyncpa [#allocation3 + $0x1], 1 }

// kernel: se_preact_bottleneck_forward.6
= control target key start
LH: loop header
LB: loop body
LE: loop exit
PB: predicated region body
PF: predicated region fallthrough
CT: control target
= control target key end

     0   :  { %v408_v0 = vmov 0.0|0.0   ;;  %vm409_vm0 = vmmov 0   ;;  %v410_v4 = vmov 0.0   ;;  %vm37_vm1 = vcmask 1041409   ;;  %s411_s30 = smov 96   ;;  %s412_s4 = smov 64   ;;  %s501_s1 = inlined_call_operand.vmem [shape: f32[32,32], index: 1, kind: input, shape index: {}]   ;;  %s502_s0 = inlined_call_operand.vmem [shape: f32[2,3,32], index: 0, kind: input, shape index: {}]   ;;  %s503_s2 = inlined_call_operand.vmem [shape: f32[32,96], index: 2, kind: input, shape index: {}]   ;;  %s504_s3 = inlined_call_operand.vmem [shape: f32[2,3,32], index: 3, kind: output, shape index: {}]  }
   0x1   :  { %381 = vmatprep.subr.bf16.mxu0 %v408_v0  ;;  %v30_v1 = vld [vmem:[%s501_s1] sm:$0xff]  ;;  %v31_v2 = vld [vmem:[%s501_s1 + $0x8] sm:$0xff]  ;;  %v32_v3 = vld [vmem:[%s501_s1 + $0x10] sm:$0xff]  ;;  %367 = vmatprep.mubr.msk.f32.mxu0 %vm409_vm0, %v410_v4  ;;  %vm39_vm2 = vcmask 261120   ;;  %v414_v50 = vmov 1966171168   ;;  %v232_v52 = vlaneseq }
   0x2   :  { %v382_v5 = vpack.c.bf16 %v31_v2, %v30_v1  ;;  %v33_v6 = vld [vmem:[%s501_s1 + $0x18] sm:$0xff]  ;;  %v14_v7 = vld [vmem:[%s502_s0] sm:$0x7]  ;;  %v15_v8 = vld [vmem:[%s502_s0 + $0x4] sm:$0x7]  ;;  %387 = vmatprep.subr.bf16.mxu1 %v408_v0  ;;  %378 = vmatprep.mubr.msk.f32.mxu1 %vm409_vm0, %v410_v4  ;;  %v230_v51 = vunpack.c.l.s4 %v414_v50  ;;  %vm253_vm3 = vcmask 253952  }
   0x3   :  { %v18_v9 = vrot.slane %v14_v7, 1  ;;  %v19_v10 = vrot.slane %v15_v8, 1  ;;  %v24_v11 = vrot.slane %v14_v7, 2  ;;  %v113_v12 = vld [vmem:[%s503_s2] sm:$0xff]  ;;  %v114_v13 = vld [vmem:[%s503_s2 + $0x8] sm:$0xff]  ;;  %v385_v14 = vpack.c.bf16 %v33_v6, %v32_v3  ;;  %v115_v23 = vld [vmem:[%s503_s2 + $0x10] sm:$0xff] }
   0x4   :  { %383 = vmatpush3.bf16.msra.mxu0 %v382_v5  ;;  %v25_v15 = vrot.slane %v15_v8, 2  ;;  %v388_v16 = vpack.c.bf16 %v114_v13, %v113_v12  ;;  %v116_v24 = vld [vmem:[%s503_s2 + $0x18] sm:$0xff]  ;;  %s413_s2 = smov 32   ;;  %v231_v53 = vunpack.c.0.s8 %v230_v51  ;;  %v233_v54 = vshrl.u32 %v232_v52, 7 }
   0x5   :  { %384 = vmatprep.subr.bf16.mxu0 %v408_v0  ;;  %v22_v17 = vadd.f32 %v18_v9, %v14_v7  ;;  %v23_v18 = vadd.f32 %v19_v10, %v15_v8  ;;  %v391_v25 = vpack.c.bf16 %v116_v24, %v115_v23 }
   0x6   :  { %389 = vmatpush3.bf16.msra.mxu1 %v388_v16  ;;  %v234_v55 = vsub.s32 %v231_v53, %v233_v54  ;;  %v286_v4 = vsub.s32 0, %v233_v54 }
   0x7   :  { %v28_v19 = vadd.f32 %v24_v11, %v22_v17  ;;  %v29_v20 = vadd.f32 %v25_v15, %v23_v18  ;;  %390 = vmatprep.subr.bf16.mxu1 %v408_v0 }
   0x8   :  { %386 = vmatpush3.bf16.msra.mxu0 %v385_v14 }
   0x9   :  { %v36_v21 = vrot.slane %v29_v20, 7 }
   0xa   :  { %392 = vmatpush3.bf16.msra.mxu1 %v391_v25 }
   0xb   :  { %v38_v22 = vsel %vm37_vm1, %v36_v21, %v28_v19 }
   0xc   :  { %368 = vmatmul.mubr.msk.f32.vlgmr.msra.gmra.mrb[0].mxu0 %vm39_vm2, %v38_v22 }
  0xdf   :  { %v108_v26 = vpop.f32.mrb[0].mxu0 }
  0xe0   :  { %v112_v27 = vmax.f32 %v108_v26, 0.0  ;;  %v369_v28 = vpop.f32.mrb[1].mxu0 }
  0xe2   :  { %379 = vmatmul.mubr.msk.f32.vlgmr.msra.gmra.mrb[0].mxu1 %vm39_vm2, %v112_v27 }
 0x1b5   :  { %v186_v29 = vpop.f32.mrb[0].mxu1 }
 0x1b6   :  { %191 = vrot.lane.b32.xlu0 %v186_v29, %s411_s30  ;;  %v380_v30 = vpop.f32.mrb[1].mxu1 }
 0x1ba   :  { %195 = vrot.lane.b32.xlu0 %v186_v29, %s412_s4 }
 0x228   :  { %v192_v31 = vpop.permute.xlu0 %191 }
 0x229   :  { %v194_v32 = vmax.f32 %v186_v29, %v192_v31 }
 0x22c   :  { %v196_v33 = vpop.permute.xlu0 %195 }
 0x22d   :  { %v198_v34 = vmax.f32 %v194_v32, %v196_v33 }
 0x22f   :  { %v199_v35 = vsub.f32 %v186_v29, %v198_v34  ;;  %203 = vrot.lane.b32.xlu1 %v198_v34, %s413_s2 }
 0x231   :  { %v200_v44 = vmul.f32 1.442695, %v199_v35 }
 0x233   :  { %209 = vrot.lane.b32.xlu1 %v198_v34, %s412_s4 }
 0x2a1   :  { %v204_v36 = vpop.permute.xlu1 %203 }
 0x2a2   :  { %v206_v37 = vsub.f32 %v186_v29, %v204_v36 }
 0x2a4   :  { %v207_v38 = vmul.f32 1.442695, %v206_v37 }
 0x2a5   :  { %v210_v39 = vpop.permute.xlu1 %209 }
 0x2a6   :  { %400 = vpow2.f32 %v207_v38  ;;  %v212_v40 = vsub.f32 %v186_v29, %v210_v39 }
 0x2a8   :  { %v213_v41 = vmul.f32 1.442695, %v212_v40 }
 0x2aa   :  { %402 = vpow2.f32 %v213_v41 }
 0x2ab   :  { %404 = vpow2.f32 %v200_v44 }
 0x2b0   :  { %v401_v42 = vpop.eup %400 }
 0x2b1   :  { %216 = vrot.lane.b32.xlu0 %v401_v42, %s411_s30 }
 0x2b4   :  { %v403_v43 = vpop.eup %402 }
 0x2b5   :  { %221 = vrot.lane.b32.xlu1 %v403_v43, %s412_s4  ;;  %v405_v46 = vpop.eup %404 }
 0x323   :  { %v217_v45 = vpop.permute.xlu0 %216 }
 0x324   :  { %v219_v47 = vadd.f32 %v405_v46, %v217_v45 }
 0x327   :  { %v222_v48 = vpop.permute.xlu1 %221 }
 0x328   :  { %v224_v49 = vadd.f32 %v222_v48, %v219_v47 }
 0x32a   :  { %406 = vrcp.f32 %v224_v49 }
 0x334   :  { %v407_v56 = vpop.eup %406 }
 0x335   :  { %v227_v57 = vmul.f32 %v407_v56, %v405_v46  ;;  %300 = vrot.lane.b32.xlu1 %v407_v56, %s412_s4  ;;  %257 = vrot.lane.b32.xlu0 %v407_v56, %s413_s2 }
 0x337   :  { %v235_v58 = vrot.slane %v227_v57, %v234_v55 }
 0x339   :  { %v236_v59 = vcombine.high %v235_v58, %v235_v58  ;;  %v243_v60 = vrot.slane %v235_v58, %v234_v55 }
 0x33b   :  { %v250_v61 = vrot.slane %v236_v59, %v234_v55  ;;  %254 = vst.msk [vmem:[%s504_s3] sm:$0x1] %vm253_vm3, %v243_v60 }
 0x33d   :  { %255 = vst.msk [vmem:[%s504_s3 + $0x4] sm:$0x1] %vm253_vm3, %v250_v61 }
 0x3a7   :  { %v301_v62 = vpop.permute.xlu1 %300  ;;  %v258_v63 = vpop.permute.xlu0 %257 }
 0x3a8   :  { %v303_v0 = vmul.f32 %v403_v43, %v301_v62  ;;  %v260_v1 = vmul.f32 %v401_v42, %v258_v63 }
 0x3aa   :  { %v311_v2 = vrot.slane %v303_v0, %v234_v55  ;;  %v268_v3 = vrot.slane %v260_v1, %v234_v55 }
 0x3ac   :  { %v312_v5 = vcombine.high %v311_v2, %v311_v2  ;;  %v269_v6 = vcombine.high %v268_v3, %v268_v3  ;;  %v276_v7 = vrot.slane %v268_v3, %v234_v55  ;;  %v319_v8 = vrot.slane %v311_v2, %v234_v55 }
 0x3ae   :  { %v287_v9 = vrot.slane %v276_v7, %v286_v4  ;;  %v283_v10 = vrot.slane %v269_v6, %v234_v55  ;;  %v326_v12 = vrot.slane %v312_v5, %v234_v55  ;;  %v330_v13 = vrot.slane %v319_v8, %v286_v4 }
 0x3b0   :  { %292 = vrot.lane.b32.xlu0 %v287_v9, %s411_s30  ;;  %v291_v11 = vrot.slane %v283_v10, %v286_v4  ;;  %v334_v14 = vrot.slane %v326_v12, %v286_v4 }
 0x3b2   :  { %294 = vrot.lane.b32.xlu1 %v291_v11, %s411_s30 }
 0x3b4   :  { %335 = vrot.lane.b32.xlu0 %v330_v13, %s412_s4 }
 0x3b6   :  { %337 = vrot.lane.b32.xlu1 %v334_v14, %s412_s4 }
 0x422   :  { %v293_v15 = vpop.permute.xlu0 %292 }
 0x423   :  { %298 = vst.msk [vmem:[%s504_s3 + $0x1] sm:$0x1] %vm253_vm3, %v293_v15 }
 0x424   :  { %v295_v16 = vpop.permute.xlu1 %294 }
 0x425   :  { %299 = vst.msk [vmem:[%s504_s3 + $0x5] sm:$0x1] %vm253_vm3, %v295_v16 }
 0x426   :  { %v336_v17 = vpop.permute.xlu0 %335 }
 0x427   :  { %341 = vst.msk [vmem:[%s504_s3 + $0x2] sm:$0x1] %vm253_vm3, %v336_v17 }
 0x428   :  { %v338_v18 = vpop.permute.xlu1 %337 }
 0x429   :  { %342 = vst.msk [vmem:[%s504_s3 + $0x6] sm:$0x1] %vm253_vm3, %v338_v18 }

// kernel: se_preact_bottleneck_forward.7
= control target key start
LH: loop header
LB: loop body
LE: loop exit
PB: predicated region body
PF: predicated region fallthrough
CT: control target
= control target key end

     0   :  { %8 = vsyncpa [#allocation3], 0  ;;  %s941_s0 = inlined_call_operand.vmem [shape: bf16[2,12,8,32], index: 0, kind: input, shape index: {}]   ;;  %s942_s1 = inlined_call_operand.vmem [shape: bf16[2,12,8,32], index: 1, kind: input, shape index: {}]   ;;  %s943_s2 = inlined_call_operand.vmem [shape: f32[2,3,32], index: 2, kind: input, shape index: {}]   ;;  %s944_s3 = inlined_call_operand.hbm [shape: f32[2,12,8,32], index: 3, kind: output, shape index: {}]  }
   0x1   :  { %10 = vsyncpa [#allocation3 + $0x1], 0  ;;  %s764_s12 = smov 0   ;;  %s766_s13 = smov 0  }
   0x2   :  { %s768_s14 = smov 0   ;;  %s770_s15 = smov 0  }
   0x3   :  { %s772_s16 = smov 0   ;;  %s774_s17 = smov 0  }
   0x4   :  { %s776_s18 = smov 0   ;;  %s778_s19 = smov 0  }
   0x5 LB: > { %s528_s20 = sadd.s32 4294967295, %s738_s19   ;;  %s529_s21 = sadd.s32 4294967294, %s738_s19   ;;  %s738_s19 = sphi %s778_s19, %s16_s19   ;;  %s734_s18 = sphi %s776_s18, %s953_s18   ;;  %s730_s17 = sphi %s774_s17, %s952_s17   ;;  %s726_s16 = sphi %s772_s16, %s951_s16   ;;  %s722_s15 = sphi %s770_s15, %s950_s15   ;;  %s718_s14 = sphi %s768_s14, %s949_s14   ;;  %s714_s13 = sphi %s766_s13, %s948_s13   ;;  %s710_s12 = sphi %s764_s12, %s947_s12  }
   0x6   : > { %s25_s22 = sadd.s32 1, %s730_s17  ;;  %s28_s23 = sadd.s32 1, %s734_s18 }
   0x7   : > { %p26_p0 = scmp.ge.s32.totalorder %s25_s22, 2  ;;  %p129_p1 = scmp.ne.s32.totalorder %s718_s14, %s714_s13 }
   0x8   : > { %p130_p2 = scmp.eq.s32.totalorder %s528_s20, 3  ;;  %p135_p5 = scmp.ne.s32.totalorder %s714_s13, %s710_s12 }
   0x9   : > { %s955_s22 = smov (%p26_p0, %s25_s22), 0  ;;  %s957_s23 = smov (!%p26_p0, %s28_s23), %s734_s18 }
   0xa   : > { %s115_s24 = ssub.s32 %s730_s17, %s955_s22  ;;  %p815_p3 = por %p130_p2, %p129_p1 }
   0xb   : > { %p30_p4 = scmp.ge.s32.totalorder %s957_s23, 2  ;;  %p136_p6 = scmp.eq.s32.totalorder %s529_s21, 3 }
   0xc   : > { %p532_p7 = scmp.ge.s32.totalorder %s738_s19, 1  ;;  %p187_p9 = scmp.lt.s32.totalorder %s738_s19, 5 }
   0xd   : > { %s959_s23 = smov (%p30_p4, %s957_s23), 0  ;;  %p824_p8 = por %p136_p6, %p135_p5 }
   0xe   : > { %s114_s27 = ssub.s32 %s734_s18, %s959_s23  ;;  %s119_s28 = sadd.s32 1, %s718_s14 }
   0xf   : > { %s116_s29 = sor.u32 %s115_s24, %s114_s27  ;;  %p188_p10 = pnand %p532_p7, %p187_p9 }
  0x10   : > { %p117_p11 = scmp.eq.s32.totalorder %s116_s29, 0  ;;  %s836_s4 = smul.u32 (!%p188_p10), 6, %s722_s15  ;;  %v279_v0 = vlaneseq (!%p188_p10)  ;;  %v740_v1 = vmov (!%p188_p10), 1966171168   ;;  %vm393_vm2 = vcmask (!%p188_p10), 261120  }
  0x11   : > { %191 = sbr.rel (%p188_p10) target bundleno = 63 (0x3f), region = 32  ;;  %p229_p12 = scmp.lt.s32.totalorder (!%p188_p10), %s726_s16, 1  ;;  %v306_v2 = vunpack.c.l.s4 (!%p188_p10), %v740_v1 }
  0x12   : > { %s833_s30 = scalar_select %p117_p11, %s718_s14, %s119_s28  }
  0x13   : > { %p231_p13 = scmp.lt.s32.totalorder (!%p188_p10), %s836_s4, 11  ;;  %v280_v3 = vshrl.u32 (!%p188_p10), %v279_v0, 7  ;;  %v281_v4 = vstv (!%p188_p10), %s836_s4  ;;  %v307_v6 = vunpack.c.0.s8 (!%p188_p10), %v306_v2 }
  0x15   : > { %v282_v5 = vadd.s32 (!%p188_p10), %v281_v4, %v280_v3  ;;  %v289_v7 = vsub.s32 (!%p188_p10), 1, %v280_v3  ;;  %v293_v8 = vsub.s32 (!%p188_p10), 2, %v280_v3  ;;  %v843_v9 = vsub.s32 (!%p188_p10), 0, %v280_v3 }
  0x16   : > { %v310_v11 = vsub.s32 (!%p188_p10), %v307_v6, %v280_v3 }
  0x17   : > { %vm284_vm0 = vcmp.lt.s32.totalorder (!%p188_p10), %v282_v5, 8  ;;  %vm283_vm1 = vcmp.lt.s32.totalorder (!%p188_p10), %v282_v5, 4 }
  0x18   : > { %s230_s5 = scalar_select %p229_p12, %s726_s16, 1 }
  0x19   : > { %s232_s6 = scalar_select %p231_p13, %s836_s4, 11 }
  0x1a   : > { %s568_s7 = smul.u32 12, %s230_s5  ;;  %s535_s8 = sshll.u32 %s230_s5, 2 }
  0x1b   : > { %s251_s11 = scalar_lea.vmem %s943_s2, %s535_s8  ;;  %s569_s8 = smul.u32 12, %s726_s16 }
  0x1c   : > { %s234_s15 = sadd.s32 %s568_s7, %s232_s6  ;;  %v277_v10 = vld [vmem:[%s251_s11] sm:$0x7]  ;;  %s225_s6 = sand.u32 1, %s714_s13  }
  0x1d   : > { %s533_s20 = sshll.u32 %s234_s15, 2  ;;  %v290_v12 = vrot.slane %v277_v10, %v289_v7  ;;  %v294_v13 = vrot.slane %v277_v10, %v293_v8  ;;  %v301_v14 = vrot.slane %v277_v10, %v843_v9  ;;  %s862_s7 = smul.u32 48, %s225_s6 }
  0x1e   : > { %s236_s27 = scalar_lea.vmem %s941_s0, %s533_s20  ;;  %s855_s5 = scalar_lea.vmem %s942_s1, %s533_s20 }
  0x1f   : > { %v295_v15 = vsel %vm284_vm0, %v290_v12, %v294_v13  ;;  %v540_v16 = vld [vmem:[%s236_s27] sm:$0xff]   ;;  %v563_v20 = vld [vmem:[%s236_s27 + $0x8] sm:$0xff]   ;;  %v564_v32 = vld [vmem:[%s236_s27 + $0x10] sm:$0xff]   ;;  %s413_s16 = sadd.s32 %s569_s8, %s836_s4  ;;  %s227_s9 = scalar_lea.vmem [#allocation2], %s862_s7 }
  0x20   : > { %v302_v17 = vsel %vm283_vm1, %v301_v14, %v295_v15  ;;  %v552_v18 = vld [vmem:[%s855_s5] sm:$0xff]   ;;  %v541_v21 = vunpack.c.l.bf16 %v540_v16  ;;  %v565_v24 = vld [vmem:[%s855_s5 + $0x8] sm:$0xff]   ;;  %v542_v27 = vunpack.c.h.bf16 %v540_v16  ;;  %v545_v28 = vunpack.c.l.bf16 %v563_v20  ;;  %v566_v41 = vld [vmem:[%s855_s5 + $0x10] sm:$0xff]   ;;  %s536_s10 = sshll.u32 %s413_s16, 7  ;;  %s416_s4 = sshll.u32 %s227_s9, 4  ;;  %s883_s4 = int_to_ptr.vmem [resolvable:$true] %s416_s4 }
  0x21   : > { %v311_v19 = vrot.slane %v302_v17, %v310_v11  ;;  %v304_v25 = vcombine.high %v302_v17, %v302_v17  ;;  %v553_v26 = vunpack.c.l.bf16 %v552_v18  ;;  %v554_v34 = vunpack.c.h.bf16 %v552_v18  ;;  %s880_s20 = scalar_lea.hbm %s944_s3, %s536_s10  ;;  %s889_s21 = scalar_lea.sflag [#allocation3], %s225_s6 }
  0x22   : > { %v557_v35 = vunpack.c.l.bf16 %v565_v24  ;;  %v546_v36 = vunpack.c.h.bf16 %v563_v20  ;;  %v558_v42 = vunpack.c.h.bf16 %v565_v24  ;;  %v549_v43 = vunpack.c.l.bf16 %v564_v32  ;;  %s644_s24 = scalar_lea.vmem %s883_s4, 768  ;;  %s741_s27 = smov [#allocation2]  }
  0x23   : > { %v327_v22 = vrot.slane %v311_v19, %v310_v11  ;;  %v319_v23 = vcombine.high %v311_v19, %v311_v19  ;;  %v318_v33 = vrot.slane %v304_v25, %v310_v11  ;;  %v561_v50 = vunpack.c.l.bf16 %v566_v41  ;;  %p645_p0 = scmp.ne.s32.totalorder %s883_s4, %s644_s24  ;;  %s648_s28 = sshll.u32 %s741_s27, 4  ;;  %s649_s28 = int_to_ptr.vmem [resolvable:$false] %s648_s28 }
  0x24   : > { %v550_v52 = vunpack.c.h.bf16 %v564_v32  ;;  %v562_v58 = vunpack.c.h.bf16 %v566_v41  ;;  %s650_s29 = scalar_lea.vmem %s649_s28, 1536  ;;  %p651_p4 = scmp.lt.s32.totalorder %s883_s4, %s649_s28 }
  0x25   : > { %v354_v29 = vrot.slane %v327_v22, %v843_v9  ;;  %v341_v30 = vrot.slane %v319_v23, %v310_v11  ;;  %v349_v31 = vcombine.high %v327_v22, %v327_v22  ;;  %v334_v44 = vrot.slane %v318_v33, %v310_v11  ;;  %p646_p1 = pnand %p645_p0, %p815_p3  ;;  %p652_p5 = scmp.lt.s32.totalorder %s650_s29, %s644_s24 }
  0x26   : > { %v320_v45 = vcombine.high %v318_v33, %v318_v33 }
  0x27   : > { %v381_v37 = vmul.f32 %v541_v21, %v354_v29  ;;  %v358_v38 = vrot.slane %v341_v30, %v843_v9  ;;  %v362_v39 = vrot.slane %v349_v31, %v843_v9  ;;  %v350_v40 = vcombine.high %v341_v30, %v341_v30  ;;  %p647_p2 = pneg %p646_p1  ;;  %p653_p6 = por %p652_p5, %p651_p4 }
  0x28   : > { %v370_v51 = vrot.slane %v334_v44, %v843_v9  ;;  %v348_v53 = vrot.slane %v320_v45, %v310_v11 }
  0x29   : > { %v387_v46 = vadd.f32 %v553_v26, %v381_v37  ;;  %v382_v47 = vmul.f32 %v542_v27, %v358_v38  ;;  %v383_v48 = vmul.f32 %v545_v28, %v362_v39  ;;  %v366_v49 = vrot.slane %v350_v40, %v843_v9  ;;  %p654_p7 = pnand %p653_p6, %p647_p2 }
  0x2a   : > { %v385_v57 = vmul.f32 %v549_v43, %v370_v51  ;;  %v374_v59 = vrot.slane %v348_v53, %v843_v9 }
  0x2b   : > { %394 = vst.msk [vmem:[%s227_s9] sm:$0xff] %vm393_vm2, %v387_v46  ;;  %v388_v54 = vadd.f32 %v554_v34, %v382_v47  ;;  %v389_v55 = vadd.f32 %v557_v35, %v383_v48  ;;  %v384_v56 = vmul.f32 %v546_v36, %v366_v49 }
  0x2c   : > { %v391_v61 = vadd.f32 %v561_v50, %v385_v57  ;;  %v386_v62 = vmul.f32 %v550_v52, %v374_v59 }
  0x2d   : > { %395 = vst.msk [vmem:[%s227_s9 + $0x8] sm:$0xff] %vm393_vm2, %v388_v54  ;;  %396 = vst.msk [vmem:[%s227_s9 + $0x10] sm:$0xff] %vm393_vm2, %v389_v55  ;;  %v390_v60 = vadd.f32 %v558_v42, %v384_v56 }
  0x2e   : > { %398 = vst.msk [vmem:[%s227_s9 + $0x20] sm:$0xff] %vm393_vm2, %v391_v61  ;;  %v392_v63 = vadd.f32 %v562_v58, %v386_v62 }
  0x2f   : > { %397 = vst.msk [vmem:[%s227_s9 + $0x18] sm:$0xff] %vm393_vm2, %v390_v60 }
  0x30   : > { %399 = vst.msk [vmem:[%s227_s9 + $0x28] sm:$0xff] %vm393_vm2, %v392_v63 }
  0x31   : > { %657 = shalt.err (!%p654_p7)
}
  0x32   : > { %s658_s5 = scalar_lea.hbm %s880_s20, 768  ;;  %s662_s8 = scalar_lea.hbm %s944_s3, 3072 }
  0x33   : > { %p659_p9 = scmp.ne.s32.totalorder %s880_s20, %s658_s5  ;;  %p663_p12 = scmp.lt.u32.totalorder %s880_s20, %s944_s3 }
  0x34   : > { %p664_p13 = scmp.lt.u32.totalorder %s662_s8, %s658_s5  ;;  %p666_p1 = scmp.lt.u32.totalorder %s658_s5, %s880_s20 }
  0x35   : > { %p660_p10 = pnand %p659_p9, %p815_p3 }
  0x36   : > { %p665_p0 = por %p664_p13, %p663_p12 }
  0x37   : > { %p661_p11 = pneg %p660_p10 }
  0x38   : > { %p667_p2 = por %p666_p1, %p665_p0 }
  0x3a   : > { %p668_p4 = pnand %p667_p2, %p661_p11 }
  0x3c   : > { %671 = shalt.err (!%p668_p4)
}
  0x3d   : > { %s742_s10 = smov 128   ;;  %s743_s11 = smov 8  }
  0x3e   : > { %570 = dma.vmem_to_hbm [thread:$0]  (%p815_p3), %s883_s4, 768, %s880_s20, %s889_s21, %s742_s10, %s742_s10, %s743_s11  }
  0x3f PF: > { %p576_p5 = scmp.ge.s32.totalorder %s738_s19, 2  ;;  %s431_s15 = sand.u32 1, %s710_s12  }
  0x40   : > { %s432_s24 = scalar_lea.sflag [#allocation3], %s431_s15 }
  0x41   : > { %p573_p6 = pnand %p576_p5, %p824_p8 }
  0x43   : > { %705 = dma.done.wait (!%p573_p6), %s432_s24, 768  }
  0x44   : > { %707 = vsyncadd (!%p573_p6), %s432_s24, 4294966528  ;;  %s16_s19 = sadd.s32 1, %s738_s19   ;;  %s947_s12 = smov %s714_s13 }
  0x45   : > { %p13_p7 = scmp.ge.s32.totalorder %s16_s19, 6   ;;  %s948_s13 = smov %s718_s14 }
  0x46   : > { %s949_s14 = smov %s833_s30  ;;  %s950_s15 = smov %s730_s17 }
  0x47   : > { %s951_s16 = smov %s734_s18  ;;  %s952_s17 = smov %s955_s22 }
  0x48   : > { %s953_s18 = smov %s959_s23  ;;  %15 = sbr.rel (!%p13_p7) target bundleno = 5 (0x5), region = 73 }
  0x4f   :  { %437 = vsyncpa [#allocation3], 1 }
  0x50   :  { %439 = vsyncpa [#allocation3 + $0x1], 1 }

// kernel: se_preact_bottleneck_forward.5
= control target key start
LH: loop header
LB: loop body
LE: loop exit
PB: predicated region body
PF: predicated region fallthrough
CT: control target
= control target key end

     0   :  { %s2144_s24 = smov 0   ;;  %s2146_s25 = smov 0   ;;  %s2562_s0 = inlined_call_operand.vmem [shape: bf16[2,18,10,8], index: 0, kind: input, shape index: {}, may-alias: {0,1}]   ;;  %s2563_s1 = inlined_call_operand.vmem [shape: bf16[2,18,10,8], index: 1, kind: input, shape index: {}, may-alias: {0,1}]   ;;  %s2564_s2 = inlined_call_operand.vmem [shape: bf16[9,8,8], index: 2, kind: input, shape index: {}]   ;;  %s2565_s3 = inlined_call_operand.vmem [shape: f32[1,8], index: 3, kind: input, shape index: {}]   ;;  %s2566_s4 = inlined_call_operand.vmem [shape: f32[1,8], index: 4, kind: input, shape index: {}]   ;;  %s2567_s5 = inlined_call_operand.vmem [shape: bf16[8,32], index: 5, kind: input, shape index: {}]   ;;  %s2568_s6 = inlined_call_operand.vmem [shape: bf16[2,12,8,32], index: 6, kind: output, shape index: {0}]   ;;  %s2569_s7 = inlined_call_operand.vmem [shape: f32[2,3,32], index: 7, kind: output, shape index: {1}]  }
   0x1   :  { %s2148_s26 = smov 0   ;;  %s2150_s27 = smov 0  }
   0x2   :  { %s2152_s28 = smov 0  }
   0x3 LB: > { %2573 = sst [smem:[#allocation2_spill]] %s2091_s26  ;;  %s27_s29 = sadd.s32 1, %s2091_s26  ;;  %s2099_s28 = sphi %s2152_s28, %s18_s28   ;;  %s2095_s27 = sphi %s2150_s27, %s2586_s27   ;;  %s2091_s26 = sphi %s2148_s26, %s2585_s26   ;;  %s2087_s25 = sphi %s2146_s25, %s2584_s25   ;;  %s2083_s24 = sphi %s2144_s24, %s2583_s24  }
   0x4   : > { %2574 = sst [smem:[#allocation3_spill]] %s2095_s27  ;;  %s30_s30 = sadd.s32 1, %s2095_s27 }
   0x5   : > { %2575 = sst [smem:[#allocation4_spill]] %s2099_s28  ;;  %p28_p0 = scmp.ge.s32.totalorder %s27_s29, 2 }
   0x6   : > { %p1661_p1 = scmp.ge.s32.totalorder %s2099_s28, 1  ;;  %p284_p2 = scmp.lt.s32.totalorder %s2099_s28, 5 }
   0x7   : > { %s2588_s29 = smov (%p28_p0, %s27_s29), 0  ;;  %s2590_s30 = smov (!%p28_p0, %s30_s30), %s2095_s27 }
   0x8   : > { %2576 = sst [smem:[#allocation5_spill]] %s2588_s29  ;;  %p285_p3 = pnand %p1661_p1, %p284_p2 }
   0x9   : > { %p32_p4 = scmp.ge.s32.totalorder %s2590_s30, 2  ;;  %s2177_s8 = smul.u32 (!%p285_p3), 6, %s2083_s24 }
   0xa   : > { %288 = sbr.rel (%p285_p3) target bundleno = 634 (0x27a), region = 44  ;;  %p341_p5 = scmp.lt.s32.totalorder (!%p285_p3), %s2087_s25, 1 }
   0xb   : > { %s2592_s30 = smov (%p32_p4, %s2590_s30), 0  ;;  %s351_s9 = sadd.s32 (!%p285_p3), 1, %s2083_s24 }
   0xc   : > { %2577 = sst [smem:[#allocation6_spill]] %s2592_s30  ;;  %p343_p6 = scmp.lt.s32.totalorder (!%p285_p3), %s2177_s8, 17 }
   0xd   : > { %s352_s10 = smul.u32 (!%p285_p3), 6, %s351_s9  ;;  %p367_p8 = scmp.lt.s32.totalorder (!%p285_p3), %s2177_s8, 11 }
   0xe   : > { %p1668_p9 = scmp.ne.s32.totalorder (!%p285_p3), %s2083_s24, 0 }
   0xf   : > { %p355_p7 = scmp.lt.s32.totalorder (!%p285_p3), %s352_s10, 17 }
  0x11   : > { %s2594_s25 = smov (!%p341_p5, %s2087_s25), 1  ;;  %s2596_s10 = smov (!%p355_p7, %s352_s10), 17 }
  0x12   : > { %s2010_s11 = smul.u32 36, %s2594_s25  ;;  %s1667_s14 = sshll.u32 %s2594_s25, 2  ;;  %vm383_vm0 = vcmask (!%p1668_p9), 256000   ;;  %v2101_v0 = vmov (!%p1668_p9), 0.0  }
  0x13   : > { %s344_s12 = scalar_select %p343_p6, %s2177_s8, 17 }
  0x14   : > { %s2186_s18 = scalar_lea.vmem %s2569_s7, %s1667_s14  ;;  %s2011_s23 = smul.u32 12, %s2594_s25 }
  0x15   : > { %s1662_s13 = sshll.u32 %s344_s12, 1  ;;  %s1664_s30 = sshll.u32 %s2596_s10, 1  ;;  %384 = vst.msk [vmem:[%s2186_s18] sm:$0x7] (!%p1668_p9), %vm383_vm0, %v2101_v0 }
  0x16   : > { %s347_s15 = sadd.s32 %s2010_s11, %s1662_s13  ;;  %s359_s29 = sadd.s32 %s2010_s11, %s1664_s30 }
  0x17   : > { %s1663_s19 = sshll.u32 %s347_s15, 2  ;;  %s1665_s12 = sshll.u32 %s359_s29, 2 }
  0x18   : > { %s2191_s22 = scalar_lea.vmem %s2562_s0, %s1663_s19  ;;  %s2197_s16 = scalar_lea.vmem %s2563_s1, %s1665_s12 }
  0x19   : > { %s368_s9 = scalar_select %p367_p8, %s2177_s8, 11 }
  0x1a   : > { %382 = sbr.rel (%p1668_p9) target bundleno = 33 (0x21), region = 48 }
  0x1b   : > { %s370_s27 = sadd.s32 %s2011_s23, %s368_s9 }
  0x1c   : > { %s1666_s26 = sshll.u32 %s370_s27, 2 }
  0x1d   : > { %s2202_s17 = scalar_lea.vmem %s2568_s6, %s1666_s26 }
  0x21 PF: > { %vm510_vm1 = vcmask 1043456   ;;  %v1702_v1 = vld [vmem:[%s2564_s2 + $0x10] sm:$0xf]  ;;  %v1669_v2 = vld [vmem:[%s2564_s2 + $0x4] sm:$0xf]  ;;  %v2102_v3 = vmov 0.0  }
  0x22   : > { %1836 = vmatprep.subr.bf16.mxu0 %v2102_v3  ;;  %1780 = vmatprep.subr.bf16.mxu1 %v2102_v3  ;;  %v886_v4 = vsel %vm510_vm1, %v1702_v1, 0  ;;  %v512_v5 = vsel %vm510_vm1, %v1669_v2, 0  ;;  %v2217_v6 = vld [vmem:[%s2191_s22] sm:$0xf]  ;;  %v2220_v7 = vld [vmem:[%s2191_s22 + $0x4] sm:$0x1] }
  0x23   : > { %1837 = vmatpush3.bf16.msra.mxu0 %v886_v4  ;;  %1781 = vmatpush3.bf16.msra.mxu1 %v512_v5  ;;  %v2223_v8 = vld [vmem:[%s2191_s22 + $0x8] sm:$0xf]  ;;  %v2226_v9 = vld [vmem:[%s2191_s22 + $0xc] sm:$0x1]  ;;  %vm2103_vm2 = vmmov 0   ;;  %v406_v10 = vshrl.u32 %v2217_v6, 16 }
  0x24   : > { %1782 = vmatprep.mubr.msk.bf16.mxu1 %vm2103_vm2, %v2102_v3  ;;  %1838 = vmatprep.mubr.msk.bf16.mxu0 %vm2103_vm2, %v2102_v3  ;;  %vm402_vm3 = vsmask.f32 3328  ;;  %v409_v11 = vshll.u32 %v2217_v6, 16  ;;  %v415_v12 = vshll.u32 %v2220_v7, 16  ;;  %v420_v13 = vshrl.u32 %v2223_v8, 16 }
  0x25   : > { %1850 = vmatprep.subr.bf16.mxu0 %v2102_v3  ;;  %v423_v14 = vshll.u32 %v2223_v8, 16  ;;  %v429_v15 = vshll.u32 %v2226_v9, 16  ;;  %v2240_v16 = vld [vmem:[%s2191_s22 + $0x10] sm:$0xf]  ;;  %1794 = vmatprep.subr.bf16.mxu1 %v2102_v3  ;;  %vm403_vm4 = vsmask.f32 7440 }
  0x26   : > { %v408_v17 = vrot.slane %v406_v10, 4  ;;  %v411_v18 = vrot.slane %v409_v11, 5  ;;  %v2244_v19 = vld [vmem:[%s2191_s22 + $0x14] sm:$0x1]  ;;  %v417_v20 = vrot.slane %v415_v12, 5  ;;  %v422_v21 = vrot.slane %v420_v13, 4  ;;  %vm2256_vm6 = vmor %vm402_vm3, %vm403_vm4 }
  0x27   : > { %v425_v22 = vrot.slane %v423_v14, 5  ;;  %vm500_vm5 = vcmask 64512   ;;  %v1710_v23 = vld [vmem:[%s2564_s2 + $0x14] sm:$0xf]  ;;  %v434_v25 = vshrl.u32 %v2240_v16, 16  ;;  %v437_v26 = vshll.u32 %v2240_v16, 16 }
  0x28   : > { %v412_v24 = vor.u32 %v411_v18, %v408_v17  ;;  %v443_v27 = vshll.u32 %v2244_v19, 16  ;;  %v2253_v28 = vld [vmem:[%s2191_s22 + $0x18] sm:$0xf]  ;;  %v431_v31 = vrot.slane %v429_v15, 5  ;;  %v972_v32 = vsel %vm510_vm1, %v1710_v23, 0 }
  0x29   : > { %v426_v30 = vor.u32 %v425_v22, %v422_v21  ;;  %v2262_v33 = vld [vmem:[%s2191_s22 + $0x1c] sm:$0x1]  ;;  %v448_v34 = vshrl.u32 %v2253_v28, 16  ;;  %v436_v36 = vrot.slane %v434_v25, 4  ;;  %v439_v37 = vrot.slane %v437_v26, 5 }
  0x2a   : > { %v413_v35 = vrot.slane %v412_v24, 4  ;;  %v445_v38 = vrot.slane %v443_v27, 5  ;;  %v2266_v39 = vld [vmem:[%s2191_s22 + $0x20] sm:$0xf]  ;;  %v451_v42 = vshll.u32 %v2253_v28, 16  ;;  %v457_v43 = vshll.u32 %v2262_v33, 16 }
  0x2b   : > { %v427_v40 = vrot.slane %v426_v30, 4  ;;  %v450_v41 = vrot.slane %v448_v34, 4  ;;  %v2271_v44 = vld [vmem:[%s2191_s22 + $0x24] sm:$0x1]  ;;  %v440_v46 = vor.u32 %v439_v37, %v436_v36  ;;  %v462_v47 = vshrl.u32 %v2266_v39, 16 }
  0x2c   : > { %v418_v45 = vsel %vm2256_vm6, %v413_v35, %v417_v20  ;;  %v465_v48 = vshll.u32 %v2266_v39, 16  ;;  %v2278_v49 = vld [vmem:[%s2191_s22 + $0x28] sm:$0xf]  ;;  %v2281_v50 = vld [vmem:[%s2191_s22 + $0x2c] sm:$0x1]  ;;  %v453_v52 = vrot.slane %v451_v42, 5  ;;  %v1677_v29 = vcombine.low %v2240_v16, %v2253_v28 }
  0x2d   : > { %v432_v51 = vsel %vm2256_vm6, %v427_v40, %v431_v31  ;;  %v459_v53 = vrot.slane %v457_v43, 5  ;;  %v471_v54 = vshll.u32 %v2271_v44, 16  ;;  %v2287_v55 = vld [vmem:[%s2197_s16] sm:$0xf]  ;;  %v441_v57 = vrot.slane %v440_v46, 4 }
  0x2e   : > { %v1670_v56 = vcombine.low %v418_v45, %v432_v51  ;;  %v464_v58 = vrot.slane %v462_v47, 4  ;;  %v467_v59 = vrot.slane %v465_v48, 5  ;;  %v454_v60 = vor.u32 %v453_v52, %v450_v41  ;;  %v401_v5 = vld [vmem:[%s2564_s2] sm:$0xf]  ;;  %v2302_v14 = vld [vmem:[%s2197_s16 + $0x4] sm:$0x1] }
  0x2f   : > { %v473_v61 = vrot.slane %v471_v54, 5  ;;  %v476_v62 = vshrl.u32 %v2278_v49, 16  ;;  %v479_v63 = vshll.u32 %v2278_v49, 16  ;;  %v446_v0 = vsel %vm2256_vm6, %v441_v57, %v445_v38  ;;  %v2334_v42 = vld [vmem:[%s2197_s16 + $0x8] sm:$0xf] }
  0x30   : > { %1783 = vmatmul.mubr.msk.bf16.vlgmr.msra.gmra.mrb[0].mxu1 %vm500_vm5, %v1670_v56  ;;  %v468_v1 = vor.u32 %v467_v59, %v464_v58  ;;  %v485_v2 = vshll.u32 %v2281_v50, 16  ;;  %v857_v4 = vshrl.u32 %v2287_v55, 16  ;;  %v1703_v10 = vcombine.low %v432_v51, %v446_v0  ;;  %v400_v46 = vld [vmem:[%s2197_s16 + $0xc] sm:$0x1]  ;;  %v1733_v56 = vld [vmem:[%s2565_s3] ss:$0 sm:$0xff] }
  0x31   : > { %1786 = vmatprep.mubr.msk.bf16.mxu1 %vm2103_vm2, %v2102_v3  ;;  %v455_v11 = vrot.slane %v454_v60, 4  ;;  %v478_v12 = vrot.slane %v476_v62, 4  ;;  %v481_v13 = vrot.slane %v479_v63, 5  ;;  %v860_v18 = vshll.u32 %v2287_v55, 16  ;;  %v1688_v63 = vld [vmem:[%s2564_s2 + $0x8] sm:$0xf] }
  0x32   : > { %v469_v15 = vrot.slane %v468_v1, 4  ;;  %v859_v17 = vrot.slane %v857_v4, 4  ;;  %1839 = vmatmul.mubr.msk.bf16.vlgmr.msra.gmra.mrb[0].mxu0 %vm500_vm5, %v1703_v10  ;;  %v596_v22 = vsel %vm510_vm1, %v401_v5, 0  ;;  %v866_v26 = vshll.u32 %v2302_v14, 16 }
  0x33   : > { %v460_v20 = vsel %vm2256_vm6, %v455_v11, %v459_v53  ;;  %v482_v21 = vor.u32 %v481_v13, %v478_v12  ;;  %1851 = vmatpush3.bf16.msra.mxu0 %v972_v32  ;;  %1842 = vmatprep.mubr.msk.bf16.mxu0 %vm2103_vm2, %v2102_v3  ;;  %v862_v25 = vrot.slane %v860_v18, 5  ;;  %v487_v30 = vrot.slane %v485_v2, 5  ;;  %v1717_v13 = vld [vmem:[%s2564_s2 + $0x18] sm:$0xf] }
  0x34   : > { %v2311_v23 = vcombine.low %v446_v0, %v460_v20  ;;  %v474_v24 = vsel %vm2256_vm6, %v469_v15, %v473_v61  ;;  %1795 = vmatpush3.bf16.msra.mxu1 %v596_v22  ;;  %1864 = vmatprep.subr.bf16.mxu0 %v2102_v3  ;;  %v868_v35 = vrot.slane %v866_v26, 5  ;;  %v670_v40 = vrot.slane %v2226_v9, 5 }
  0x35   : > { %v483_v27 = vrot.slane %v482_v21, 4  ;;  %v863_v31 = vor.u32 %v862_v25, %v859_v17  ;;  %1808 = vmatprep.subr.bf16.mxu1 %v2102_v3  ;;  %v1704_v32 = vcombine.low %v460_v20, %v474_v24  ;;  %v674_v41 = vrot.slane %v2244_v19, 5 }
  0x36   : > { %vm661_vm7 = vcmask 1042432   ;;  %vm662_vm8 = vcmask 1046532   ;;  %v1112_v43 = vshrl.u32 %v2334_v42, 16  ;;  %v1115_v45 = vshll.u32 %v2334_v42, 16 }
  0x37   : > { %v864_v34 = vrot.slane %v863_v31, 4  ;;  %v488_v36 = vsel %vm2256_vm6, %v483_v27, %v487_v30  ;;  %v1683_v48 = vrot.slane %v2223_v8, 9  ;;  %v1684_v51 = vrot.slane %v2240_v16, 9  ;;  %vm2354_vm9 = vmor %vm661_vm7, %vm662_vm8 }
  0x38   : > { %1787 = vmatmul.mubr.msk.bf16.gmra.mrb[4].mxu1 %vm500_vm5, %v2311_v23  ;;  %v2327_v37 = vcombine.low %v474_v24, %v488_v36  ;;  %v1696_v52 = vcombine.low %v2223_v8, %v2240_v16  ;;  %v1709_v9 = vrot.slane %v2287_v55, 9  ;;  %v954_v19 = vrot.slane %v2302_v14, 5 }
  0x39   : > { %1790 = vmatprep.mubr.msk.bf16.mxu1 %vm2103_vm2, %v2102_v3  ;;  %v869_v38 = vsel %vm2256_vm6, %v864_v34, %v868_v35  ;;  %v1697_v53 = vcombine.low %v2253_v28, %v2266_v39  ;;  %v1698_v54 = vcombine.low %v2278_v49, %v2287_v55  ;;  %v1114_v57 = vrot.slane %v1112_v43, 4 }
  0x3a   : > { %1843 = vmatmul.mubr.msk.bf16.gmra.mrb[4].mxu0 %vm500_vm5, %v1704_v32  ;;  %v1705_v47 = vcombine.low %v488_v36, %v869_v38  ;;  %v1117_v58 = vrot.slane %v1115_v45, 5  ;;  %v1121_v59 = vshll.u32 %v400_v46, 16  ;;  %v1727_v60 = vrot.slane %v2334_v42, 9 }
  0x3b   : > { %1846 = vmatprep.mubr.msk.bf16.mxu0 %vm2103_vm2, %v2102_v3  ;;  %v1201_v61 = vrot.slane %v400_v46, 5  ;;  %v1676_v62 = vcombine.low %v2217_v6, %v2223_v8  ;;  %v671_v2 = vsel %vm2354_vm9, %v1683_v48, %v670_v40  ;;  %v675_v4 = vsel %vm2354_vm9, %v1684_v51, %v674_v41  ;;  %v1311_v8 = vld [vmem:[%s2567_s5] sm:$0xf] }
  0x3c   : > { %v1118_v0 = vor.u32 %v1117_v58, %v1114_v57  ;;  %v1123_v1 = vrot.slane %v1121_v59, 5  ;;  %v2373_v5 = vsel %vm2354_vm9, %v1709_v9, %v954_v19  ;;  %v709_v14 = vsel %vm510_vm1, %v1688_v63, 0  ;;  %v1734_v59 = vld [vmem:[%s2566_s4] ss:$0 sm:$0xff] }
  0x3d   : > { %v2377_v10 = vsel %vm2354_vm9, %v1727_v60, %v1201_v61  ;;  %v1711_v15 = vcombine.low %v671_v2, %v675_v4  ;;  %v1685_v17 = vrot.slane %v2253_v28, 9  ;;  %v678_v20 = vrot.slane %v2262_v33, 5 }
  0x3e   : > { %v1119_v11 = vrot.slane %v1118_v0, 4  ;;  %v1729_v12 = vcombine.low %v2373_v5, %v2377_v10  ;;  %v1686_v21 = vrot.slane %v2266_v39, 9  ;;  %v682_v22 = vrot.slane %v2271_v44, 5 }
  0x3f   : > { %v1046_v25 = vsel %vm510_vm1, %v1717_v13, 0  ;;  %v679_v33 = vsel %vm2354_vm9, %v1685_v17, %v678_v20  ;;  %v1687_v27 = vrot.slane %v2278_v49, 9  ;;  %v686_v30 = vrot.slane %v2281_v50, 5 }
  0x40   : > { %1791 = vmatmul.mubr.msk.bf16.gmra.mrb[8].mxu1 %vm500_vm5, %v2327_v37  ;;  %v1124_v18 = vsel %vm2256_vm6, %v1119_v11, %v1123_v1  ;;  %v683_v44 = vsel %vm2354_vm9, %v1686_v21, %v682_v22  ;;  %v1678_v31 = vcombine.low %v2266_v39, %v2278_v49  ;;  %v666_v34 = vrot.slane %v2220_v7, 5  ;;  %v1722_v7 = vld [vmem:[%s2564_s2 + $0x1c] sm:$0xf] }
  0x41   : > { %1796 = vmatprep.mubr.msk.bf16.mxu1 %vm2103_vm2, %v2102_v3  ;;  %v2392_v24 = vcombine.low %v869_v38, %v1124_v18  ;;  %v1712_v26 = vcombine.low %v679_v33, %v683_v44  ;;  %v687_v32 = vsel %vm2354_vm9, %v1687_v27, %v686_v30  ;;  %v1682_v35 = vrot.slane %v2217_v6, 9  ;;  %v1695_v38 = vld [vmem:[%s2564_s2 + $0xc] sm:$0xf] }
  0x42   : > { %1847 = vmatmul.mubr.msk.bf16.gmra.mrb[8].mxu0 %vm500_vm5, %v1705_v47  ;;  %v1713_v50 = vcombine.low %v687_v32, %v2373_v5  ;;  %v791_v40 = vsel %vm510_vm1, %v1695_v38, 0  ;;  %v1133_v41 = vsel %vm510_vm1, %v1722_v7, 0  ;;  %v1690_v43 = vcombine.low %v675_v4, %v679_v33  ;;  %v1728_v47 = vld [vmem:[%s2564_s2 + $0x20] sm:$0xf] }
  0x43   : > { %1852 = vmatprep.mubr.msk.bf16.mxu0 %vm2103_vm2, %v2102_v3  ;;  %v667_v36 = vsel %vm2354_vm9, %v1682_v35, %v666_v34  ;;  %v1691_v45 = vcombine.low %v683_v44, %v687_v32  ;;  %v1718_v46 = vcombine.low %v2287_v55, %v2334_v42  ;;  %v1211_v42 = vsel %vm510_vm1, %v1728_v47, 0 }
  0x44   : > { %v1689_v6 = vcombine.low %v667_v36, %v671_v2  ;;  %v1322_v16 = vsel %vm510_vm1, %v1311_v8, 0  ;;  %vm1394_vm10 = vcmask 261120   ;;  %vm1387_vm11 = vcmask 257024  }
  0x45   : > { %vm1453_vm12 = vcmask 1041409   ;;  %vm1455_vm13 = vcmask 1042434   ;;  %vm1457_vm14 = vcmask 1043459   ;;  %vm1459_vm3 = vcmask 1044484  }
  0x46   : > { %vm1461_vm7 = vcmask 1045509  }
  0x48   : > { %1797 = vmatmul.mubr.msk.bf16.vlgmr.msra.gmra.mrb[0].mxu1 %vm500_vm5, %v1676_v62 }
  0x49   : > { %1800 = vmatprep.mubr.msk.bf16.mxu1 %vm2103_vm2, %v2102_v3  ;;  %1809 = vmatpush3.bf16.msra.mxu1 %v709_v14 }
  0x4a   : > { %1822 = vmatprep.subr.bf16.mxu1 %v2102_v3  ;;  %1853 = vmatmul.mubr.msk.bf16.vlgmr.msra.gmra.mrb[0].mxu0 %vm500_vm5, %v1711_v15 }
  0x4b   : > { %1865 = vmatpush3.bf16.msra.mxu0 %v1046_v25  ;;  %1856 = vmatprep.mubr.msk.bf16.mxu0 %vm2103_vm2, %v2102_v3 }
  0x4c   : > { %1878 = vmatprep.subr.bf16.mxu0 %v2102_v3 }
  0x50   : > { %1801 = vmatmul.mubr.msk.bf16.gmra.mrb[4].mxu1 %vm500_vm5, %v1677_v29 }
  0x51   : > { %1804 = vmatprep.mubr.msk.bf16.mxu1 %vm2103_vm2, %v2102_v3 }
  0x52   : > { %1857 = vmatmul.mubr.msk.bf16.gmra.mrb[4].mxu0 %vm500_vm5, %v1712_v26 }
  0x53   : > { %1860 = vmatprep.mubr.msk.bf16.mxu0 %vm2103_vm2, %v2102_v3 }
  0x58   : > { %1805 = vmatmul.mubr.msk.bf16.gmra.mrb[8].mxu1 %vm500_vm5, %v1678_v31 }
  0x59   : > { %1810 = vmatprep.mubr.msk.bf16.mxu1 %vm2103_vm2, %v2102_v3 }
  0x5a   : > { %1861 = vmatmul.mubr.msk.bf16.gmra.mrb[8].mxu0 %vm500_vm5, %v1713_v50 }
  0x5b   : > { %1866 = vmatprep.mubr.msk.bf16.mxu0 %vm2103_vm2, %v2102_v3 }
  0x60   : > { %1811 = vmatmul.mubr.msk.bf16.vlgmr.msra.gmra.mrb[0].mxu1 %vm500_vm5, %v1689_v6 }
  0x61   : > { %1814 = vmatprep.mubr.msk.bf16.mxu1 %vm2103_vm2, %v2102_v3  ;;  %1823 = vmatpush3.bf16.msra.mxu1 %v791_v40 }
  0x62   : > { %1906 = vmatprep.subr.bf16.mxu1 %v2102_v3  ;;  %1867 = vmatmul.mubr.msk.bf16.vlgmr.msra.gmra.mrb[0].mxu0 %vm500_vm5, %v1677_v29 }
  0x63   : > { %1879 = vmatpush3.bf16.msra.mxu0 %v1133_v41  ;;  %1870 = vmatprep.mubr.msk.bf16.mxu0 %vm2103_vm2, %v2102_v3 }
  0x64   : > { %1892 = vmatprep.subr.bf16.mxu0 %v2102_v3 }
  0x68   : > { %1815 = vmatmul.mubr.msk.bf16.gmra.mrb[4].mxu1 %vm500_vm5, %v1690_v43 }
  0x69   : > { %1818 = vmatprep.mubr.msk.bf16.mxu1 %vm2103_vm2, %v2102_v3 }
  0x6a   : > { %1871 = vmatmul.mubr.msk.bf16.gmra.mrb[4].mxu0 %vm500_vm5, %v1678_v31 }
  0x6b   : > { %1874 = vmatprep.mubr.msk.bf16.mxu0 %vm2103_vm2, %v2102_v3 }
  0x70   : > { %1819 = vmatmul.mubr.msk.bf16.gmra.mrb[8].mxu1 %vm500_vm5, %v1691_v45 }
  0x71   : > { %1824 = vmatprep.mubr.msk.bf16.mxu1 %vm2103_vm2, %v2102_v3 }
  0x72   : > { %1875 = vmatmul.mubr.msk.bf16.gmra.mrb[8].mxu0 %vm500_vm5, %v1718_v46 }
  0x73   : > { %1880 = vmatprep.mubr.msk.bf16.mxu0 %vm2103_vm2, %v2102_v3 }
  0x78   : > { %1825 = vmatmul.mubr.msk.bf16.vlgmr.msra.gmra.mrb[0].mxu1 %vm500_vm5, %v1696_v52 }
  0x79   : > { %1828 = vmatprep.mubr.msk.bf16.mxu1 %vm2103_vm2, %v2102_v3  ;;  %1907 = vmatpush3.bf16.msra.mxu1 %v1322_v16 }
  0x7a   : > { %1881 = vmatmul.mubr.msk.bf16.vlgmr.msra.gmra.mrb[0].mxu0 %vm500_vm5, %v2311_v23 }
  0x7b   : > { %1893 = vmatpush3.bf16.msra.mxu0 %v1211_v42  ;;  %1884 = vmatprep.mubr.msk.bf16.mxu0 %vm2103_vm2, %v2102_v3 }
  0x80   : > { %1829 = vmatmul.mubr.msk.bf16.gmra.mrb[4].mxu1 %vm500_vm5, %v1697_v53 }
  0x81   : > { %1832 = vmatprep.mubr.msk.bf16.mxu1 %vm2103_vm2, %v2102_v3 }
  0x82   : > { %1885 = vmatmul.mubr.msk.bf16.gmra.mrb[4].mxu0 %vm500_vm5, %v2327_v37 }
  0x83   : > { %1888 = vmatprep.mubr.msk.bf16.mxu0 %vm2103_vm2, %v2102_v3 }
  0x88   : > { %1833 = vmatmul.mubr.msk.bf16.gmra.mrb[8].mxu1 %vm500_vm5, %v1698_v54 }
  0x89   : > { %1908 = vmatprep.mubr.msk.bf16.mxu1 %vm2103_vm2, %v2102_v3 }
  0x8a   : > { %1889 = vmatmul.mubr.msk.bf16.gmra.mrb[8].mxu0 %vm500_vm5, %v2392_v24 }
  0x8b   : > { %1894 = vmatprep.mubr.msk.bf16.mxu0 %vm2103_vm2, %v2102_v3 }
  0x92   : > { %1895 = vmatmul.mubr.msk.bf16.vlgmr.msra.gmra.mrb[0].mxu0 %vm500_vm5, %v1690_v43 }
  0x93   : > { %1898 = vmatprep.mubr.msk.bf16.mxu0 %vm2103_vm2, %v2102_v3 }
  0x9a   : > { %1899 = vmatmul.mubr.msk.bf16.gmra.mrb[4].mxu0 %vm500_vm5, %v1691_v45 }
  0x9b   : > { %1902 = vmatprep.mubr.msk.bf16.mxu0 %vm2103_vm2, %v2102_v3 }
  0xa2   : > { %1903 = vmatmul.mubr.msk.bf16.gmra.mrb[8].mxu0 %vm500_vm5, %v1729_v12 }
 0x14b   : > { %v827_v28 = vpop.f32.mrb[0].mxu1 }
 0x14c   : > { %v1826_v39 = vpop.f32.mrb[1].mxu1 }
 0x14d   : > { %v830_v49 = vpop.f32.mrb[2].mxu1 }
 0x14e   : > { %v1827_v55 = vpop.f32.mrb[3].mxu1 }
 0x153   : > { %v835_v23 = vpop.f32.mrb[4].mxu1 }
 0x154   : > { %v1830_v37 = vpop.f32.mrb[5].mxu1 }
 0x155   : > { %v838_v48 = vpop.f32.mrb[6].mxu1 }
 0x156   : > { %v1831_v51 = vpop.f32.mrb[7].mxu1 }
 0x15b   : > { %v843_v52 = vpop.f32.mrb[8].mxu1 }
 0x15c   : > { %v1834_v9 = vpop.f32.mrb[9].mxu1 }
 0x15d   : > { %v846_v19 = vpop.f32.mrb[10].mxu1 }
 0x15e   : > { %v1835_v53 = vpop.f32.mrb[11].mxu1 }
 0x165   : > { %v1247_v54 = vpop.f32.mrb[0].mxu0 }
 0x166   : > { %v1920_v57 = vadd.f32 %v1247_v54, %v827_v28  ;;  %v1896_v58 = vpop.f32.mrb[1].mxu0 }
 0x167   : > { %v1250_v60 = vpop.f32.mrb[2].mxu0 }
 0x168   : > { %v1283_v61 = vmul.f32 %v1920_v57, %v1733_v56  ;;  %v1921_v62 = vadd.f32 %v1250_v60, %v830_v49  ;;  %v1897_v63 = vpop.f32.mrb[3].mxu0 }
 0x16a   : > { %v1296_v0 = vadd.f32 %v1734_v59, %v1283_v61  ;;  %v1284_v1 = vmul.f32 %v1921_v62, %v1733_v56  ;;  %v1438_v61 = vlaneseq }
 0x16c   : > { %v1297_v2 = vadd.f32 %v1734_v59, %v1284_v1  ;;  %v1302_v5 = vmax.f32 %v1296_v0, 0.0 }
 0x16d   : > { %v1255_v4 = vpop.f32.mrb[4].mxu0 }
 0x16e   : > { %v1303_v10 = vmax.f32 %v1297_v2, 0.0  ;;  %v1922_v11 = vadd.f32 %v1255_v4, %v835_v23  ;;  %v1900_v12 = vpop.f32.mrb[5].mxu0 }
 0x16f   : > { %v1258_v13 = vpop.f32.mrb[6].mxu0 }
 0x170   : > { %v1308_v14 = vpack.c.bf16 %v1303_v10, %v1302_v5  ;;  %v1285_v15 = vmul.f32 %v1922_v11, %v1733_v56  ;;  %v1923_v17 = vadd.f32 %v1258_v13, %v838_v48  ;;  %v1901_v18 = vpop.f32.mrb[7].mxu0 }
 0x172   : > { %v1298_v20 = vadd.f32 %v1734_v59, %v1285_v15  ;;  %v1286_v21 = vmul.f32 %v1923_v17, %v1733_v56  ;;  %1909 = vmatmul.mubr.msk.bf16.vlgmr.msra.gmra.mrb[12].mxu1 %vm500_vm5, %v1308_v14  ;;  %v1439_v14 = vshrl.u32 %v1438_v61, 7  ;;  %v1473_v61 = vld [vmem:[%s2186_s18] sm:$0x1] }
 0x173   : > { %1912 = vmatprep.mubr.msk.bf16.mxu1 %vm2103_vm2, %v2102_v3 }
 0x174   : > { %v1299_v22 = vadd.f32 %v1734_v59, %v1286_v21  ;;  %v1304_v25 = vmax.f32 %v1298_v20, 0.0  ;;  %v1440_v21 = vstv %s2177_s8 }
 0x175   : > { %v1263_v24 = vpop.f32.mrb[8].mxu0 }
 0x176   : > { %v1305_v29 = vmax.f32 %v1299_v22, 0.0  ;;  %v1924_v33 = vadd.f32 %v1263_v24, %v843_v52  ;;  %v1904_v44 = vpop.f32.mrb[9].mxu0 }
 0x177   : > { %v1266_v26 = vpop.f32.mrb[10].mxu0 }
 0x178   : > { %v1309_v27 = vpack.c.bf16 %v1305_v29, %v1304_v25  ;;  %v1287_v30 = vmul.f32 %v1924_v33, %v1733_v56  ;;  %v1925_v31 = vadd.f32 %v1266_v26, %v846_v19  ;;  %v1905_v32 = vpop.f32.mrb[11].mxu0 }
 0x17a   : > { %v1300_v34 = vadd.f32 %v1734_v59, %v1287_v30  ;;  %v1288_v35 = vmul.f32 %v1925_v31, %v1733_v56  ;;  %1913 = vmatmul.mubr.msk.bf16.gmra.mrb[16].mxu1 %vm500_vm5, %v1309_v27  ;;  %v1441_v27 = vadd.s32 %v1440_v21, %v1439_v14 }
 0x17b   : > { %1916 = vmatprep.mubr.msk.bf16.mxu1 %vm2103_vm2, %v2102_v3 }
 0x17c   : > { %v1301_v50 = vadd.f32 %v1734_v59, %v1288_v35  ;;  %v1306_v36 = vmax.f32 %v1300_v34, 0.0  ;;  %vm1442_vm15 = vcmp.ge.s32.totalorder %v1441_v27, 0  ;;  %vm1443_vm0 = vcmp.lt.s32.totalorder %v1441_v27, 4 }
 0x17d   : > { %vm1478_vm1 = vcmp.ge.s32.totalorder %v1441_v27, 4  ;;  %vm1479_vm2 = vcmp.lt.s32.totalorder %v1441_v27, 8  ;;  %vm1495_vm4 = vcmp.ge.s32.totalorder %v1441_v27, 8  ;;  %vm1444_vm6 = vmand %vm1442_vm15, %vm1443_vm0 }
 0x17e   : > { %v1307_v38 = vmax.f32 %v1301_v50, 0.0  ;;  %vm1480_vm8 = vmand %vm1478_vm1, %vm1479_vm2 }
 0x180   : > { %v1310_v6 = vpack.c.bf16 %v1307_v38, %v1306_v36 }
 0x182   : > { %1917 = vmatmul.mubr.msk.bf16.gmra.mrb[20].mxu1 %vm500_vm5, %v1310_v6  ;;  %vm1496_vm5 = vcmp.lt.s32.totalorder %v1441_v27, 12 }
 0x183   : > { %vm1497_vm9 = vmand %vm1495_vm4, %vm1496_vm5 }
 0x245   : > { %v1358_v7 = vpop.f32.mrb[12].mxu1 }
 0x246   : > { %v1381_v40 = vpack.c.bf16 %v1358_v7, %v1358_v7  ;;  %v1395_v41 = vsel %vm1394_vm10, %v1358_v7, 0.0  ;;  %v1910_v43 = vpop.f32.mrb[13].mxu1 }
 0x247   : > { %v1396_v45 = vrot.slane %v1395_v41, 4  ;;  %v1361_v46 = vpop.f32.mrb[14].mxu1 }
 0x248   : > { %1388 = vst.msk [vmem:[%s2202_s17] sm:$0xf] %vm1387_vm11, %v1381_v40  ;;  %v1382_v47 = vpack.c.bf16 %v1361_v46, %v1361_v46  ;;  %v1402_v3 = vsel %vm1394_vm10, %v1361_v46, 0.0  ;;  %v1911_v42 = vpop.f32.mrb[15].mxu1 }
 0x249   : > { %v1397_v8 = vadd.f32 %v1396_v45, %v1395_v41  ;;  %v1403_v16 = vrot.slane %v1402_v3, 4 }
 0x24a   : > { %1389 = vst.msk [vmem:[%s2202_s17 + $0x4] sm:$0xf] %vm1387_vm11, %v1382_v47 }
 0x24b   : > { %v1398_v28 = vrot.slane %v1397_v8, 2  ;;  %v1404_v39 = vadd.f32 %v1403_v16, %v1402_v3 }
 0x24d   : > { %v1399_v49 = vadd.f32 %v1398_v28, %v1397_v8  ;;  %v1405_v55 = vrot.slane %v1404_v39, 2  ;;  %v1366_v23 = vpop.f32.mrb[16].mxu1 }
 0x24e   : > { %v1383_v37 = vpack.c.bf16 %v1366_v23, %v1366_v23  ;;  %v1409_v48 = vsel %vm1394_vm10, %v1366_v23, 0.0  ;;  %v1914_v51 = vpop.f32.mrb[17].mxu1 }
 0x24f   : > { %v1400_v52 = vrot.slane %v1399_v49, 1  ;;  %v1406_v9 = vadd.f32 %v1405_v55, %v1404_v39  ;;  %v1410_v19 = vrot.slane %v1409_v48, 4  ;;  %v1369_v53 = vpop.f32.mrb[18].mxu1 }
 0x250   : > { %1390 = vst.msk [vmem:[%s2202_s17 + $0x8] sm:$0xf] %vm1387_vm11, %v1383_v37  ;;  %v1384_v54 = vpack.c.bf16 %v1369_v53, %v1369_v53  ;;  %v1416_v56 = vsel %vm1394_vm10, %v1369_v53, 0.0  ;;  %v1915_v57 = vpop.f32.mrb[19].mxu1 }
 0x251   : > { %v1407_v58 = vrot.slane %v1406_v9, 1  ;;  %v1411_v59 = vadd.f32 %v1410_v19, %v1409_v48  ;;  %v1417_v60 = vrot.slane %v1416_v56, 4  ;;  %v1401_v62 = vadd.f32 %v1400_v52, %v1399_v49 }
 0x252   : > { %1391 = vst.msk [vmem:[%s2202_s17 + $0xc] sm:$0xf] %vm1387_vm11, %v1384_v54 }
 0x253   : > { %v1408_v63 = vadd.f32 %v1407_v58, %v1406_v9  ;;  %v1412_v0 = vrot.slane %v1411_v59, 2  ;;  %v1418_v1 = vadd.f32 %v1417_v60, %v1416_v56 }
 0x255   : > { %v1454_v2 = vsel %vm1453_vm12, %v1408_v63, %v1401_v62  ;;  %v1413_v4 = vadd.f32 %v1412_v0, %v1411_v59  ;;  %v1419_v5 = vrot.slane %v1418_v1, 2  ;;  %v1374_v10 = vpop.f32.mrb[20].mxu1  ;;  %v1491_v62 = vld [vmem:[%s2186_s18 + $0x1] sm:$0x1]  ;;  %v1508_v63 = vld [vmem:[%s2186_s18 + $0x2] sm:$0x1] }
 0x256   : > { %v1385_v11 = vpack.c.bf16 %v1374_v10, %v1374_v10  ;;  %v1423_v12 = vsel %vm1394_vm10, %v1374_v10, 0.0  ;;  %v1918_v13 = vpop.f32.mrb[21].mxu1 }
 0x257   : > { %v1414_v15 = vrot.slane %v1413_v4, 1  ;;  %v1420_v17 = vadd.f32 %v1419_v5, %v1418_v1  ;;  %v1424_v18 = vrot.slane %v1423_v12, 4  ;;  %v1377_v20 = vpop.f32.mrb[22].mxu1 }
 0x258   : > { %1392 = vst.msk [vmem:[%s2202_s17 + $0x10] sm:$0xf] %vm1387_vm11, %v1385_v11  ;;  %v1386_v22 = vpack.c.bf16 %v1377_v20, %v1377_v20  ;;  %v1430_v24 = vsel %vm1394_vm10, %v1377_v20, 0.0  ;;  %v1919_v25 = vpop.f32.mrb[23].mxu1  ;;  %vm1465_vm10 = vcmask 259072  }
 0x259   : > { %v1415_v29 = vadd.f32 %v1414_v15, %v1413_v4  ;;  %v1421_v33 = vrot.slane %v1420_v17, 1  ;;  %v1425_v44 = vadd.f32 %v1424_v18, %v1423_v12  ;;  %v1431_v26 = vrot.slane %v1430_v24, 4 }
 0x25a   : > { %1393 = vst.msk [vmem:[%s2202_s17 + $0x14] sm:$0xf] %vm1387_vm11, %v1386_v22  ;;  %vm1476_vm11 = vcmask 253952  }
 0x25b   : > { %v1456_v30 = vsel %vm1455_vm13, %v1415_v29, %v1454_v2  ;;  %v1422_v31 = vadd.f32 %v1421_v33, %v1420_v17  ;;  %v1426_v32 = vrot.slane %v1425_v44, 2  ;;  %v1432_v34 = vadd.f32 %v1431_v26, %v1430_v24 }
 0x25d   : > { %v1458_v35 = vsel %vm1457_vm14, %v1422_v31, %v1456_v30  ;;  %v1427_v50 = vadd.f32 %v1426_v32, %v1425_v44  ;;  %v1433_v36 = vrot.slane %v1432_v34, 2 }
 0x25f   : > { %v1428_v38 = vrot.slane %v1427_v50, 1  ;;  %v1434_v6 = vadd.f32 %v1433_v36, %v1432_v34 }
 0x261   : > { %v1429_v7 = vadd.f32 %v1428_v38, %v1427_v50  ;;  %v1435_v40 = vrot.slane %v1434_v6, 1 }
 0x263   : > { %v1460_v41 = vsel %vm1459_vm3, %v1429_v7, %v1458_v35  ;;  %v1436_v43 = vadd.f32 %v1435_v40, %v1434_v6 }
 0x265   : > { %v1462_v45 = vsel %vm1461_vm7, %v1436_v43, %v1460_v41 }
 0x266   : > { %v1464_v46 = vsel %vm1444_vm6, %v1462_v45, 0.0  ;;  %v1483_v47 = vsel %vm1480_vm8, %v1462_v45, 0.0  ;;  %v1500_v3 = vsel %vm1497_vm9, %v1462_v45, 0.0 }
 0x267   : > { %v1466_v42 = vsel %vm1465_vm10, %v1464_v46, 0.0  ;;  %v1484_v8 = vsel %vm1465_vm10, %v1483_v47, 0.0  ;;  %v1501_v16 = vsel %vm1465_vm10, %v1500_v3, 0.0 }
 0x268   : > { %v1467_v28 = vrot.slane %v1466_v42, 4  ;;  %v1485_v39 = vrot.slane %v1484_v8, 4  ;;  %v1502_v49 = vrot.slane %v1501_v16, 4 }
 0x26a   : > { %v1468_v55 = vadd.f32 %v1467_v28, %v1466_v42  ;;  %v1486_v23 = vadd.f32 %v1485_v39, %v1484_v8  ;;  %v1503_v37 = vadd.f32 %v1502_v49, %v1501_v16 }
 0x26c   : > { %v1469_v48 = vrot.slane %v1468_v55, 2  ;;  %v1487_v51 = vrot.slane %v1486_v23, 2  ;;  %v1504_v52 = vrot.slane %v1503_v37, 2 }
 0x26e   : > { %v1470_v9 = vadd.f32 %v1469_v48, %v1468_v55  ;;  %v1488_v19 = vadd.f32 %v1487_v51, %v1486_v23  ;;  %v1505_v53 = vadd.f32 %v1504_v52, %v1503_v37 }
 0x270   : > { %v1471_v54 = vrot.slane %v1470_v9, 1  ;;  %v1489_v56 = vrot.slane %v1488_v19, 1  ;;  %v1506_v57 = vrot.slane %v1505_v53, 1 }
 0x272   : > { %v1472_v58 = vadd.f32 %v1471_v54, %v1470_v9  ;;  %v1490_v59 = vadd.f32 %v1489_v56, %v1488_v19  ;;  %v1507_v60 = vadd.f32 %v1506_v57, %v1505_v53 }
 0x274   : > { %v1474_v0 = vmul.f32 0.03125, %v1472_v58  ;;  %v1492_v1 = vmul.f32 0.03125, %v1490_v59  ;;  %v1509_v2 = vmul.f32 0.03125, %v1507_v60 }
 0x276   : > { %v1475_v4 = vadd.f32 %v1474_v0, %v1473_v61  ;;  %v1493_v5 = vadd.f32 %v1492_v1, %v1491_v62  ;;  %v1510_v10 = vadd.f32 %v1509_v2, %v1508_v63 }
 0x278   : > { %1477 = vst.msk [vmem:[%s2186_s18] sm:$0x1] %vm1476_vm11, %v1475_v4  ;;  %1494 = vst.msk [vmem:[%s2186_s18 + $0x1] sm:$0x1] %vm1476_vm11, %v1493_v5 }
 0x279   : > { %1511 = vst.msk [vmem:[%s2186_s18 + $0x2] sm:$0x1] %vm1476_vm11, %v1510_v10 }
 0x27a PF: > { %s2582_s8 = sld [smem:[#allocation4_spill]]  ;;  %s2583_s24 = sld [smem:[#allocation2_spill]] }
 0x27b   : > { %s2584_s25 = sld [smem:[#allocation3_spill]]  ;;  %s2585_s26 = sld [smem:[#allocation5_spill]] }
 0x27c   : > { %s2586_s27 = sld [smem:[#allocation6_spill]] }
 0x280   : > { %s18_s28 = sadd.s32 1, %s2582_s8  }
 0x281   : > { %p15_p10 = scmp.ge.s32.totalorder %s18_s28, 6  }
 0x283   :  { %17 = sbr.rel (!%p15_p10) target bundleno = 3 (0x3), region = 101 }

</bundles_post_ra>
